<compile_context>
chip_gen: v6e
topology: v6e:2x2x1
jax: 0.10.0
libtpu: 0.0.40
codegen_flags: <defaults>
</compile_context>

<pallas_src>
import functools

import numpy as np
import jax
import jax.numpy as jnp
from jax import lax
from jax.experimental import pallas as pl
from jax.experimental.pallas import tpu as pltpu

# Tap order: (dy, dx) row-major over the 3x3 stencil -- matches HWIO weights.
_TAPS = tuple((dy, dx) for dy in (-1, 0, 1) for dx in (-1, 0, 1))
_LANE_PAD = 128  # zero halo (in flattened pixels) on each side of the rows


def _round_up(x, m):
    return ((x + m - 1) // m) * m


def _apply_act(v, activation):
    if activation == 'relu':
        return jnp.maximum(v, 0.0)
    if activation == 'gelu':
        # TODO(synk): PyTorch F.gelu defaults to exact erf; tanh approx used
        # here for TPU-friendly lowering (not exercised by the relu test).
        return jax.nn.gelu(v, approximate=True)
    raise NotImplementedError(activation)


# ----------------------------------------------------------------------------
# Fused kernel: one batch element per grid step, everything resident in VMEM.
# ----------------------------------------------------------------------------
def _rdb_fused_kernel(x_ref, wmask_ref, *refs, W, num_layer, cpad, activation):
    """refs = (w_l, b_l) * num_layer, w1x1, b1x1, o_ref, pact, stacked.

    x_ref     : (1, C, H*W)   input, channel-major, H*W on lanes
    wmask_ref : (3, H*W)      column validity masks for dx = -1, 0, +1
    w_l       : (growth, 9*cpad)   column = tap*cpad + in_channel (zero padded)
    b_l       : (growth, 1)
    w1x1      : (C, C_total)
    b1x1      : (C, 1)
    o_ref     : (1, C, H*W)
    pact      : (C_total, PAD + H*W + PAD)  zero-halo flattened activations
    stacked   : (9*cpad, H*W)               per-tap shifted copies (matmul RHS)
    """
    layer_refs = refs[:2 * num_layer]
    w1_ref = refs[2 * num_layer]
    b1_ref = refs[2 * num_layer + 1]
    o_ref = refs[2 * num_layer + 2]
    pact_ref = refs[2 * num_layer + 3]
    stacked_ref = refs[2 * num_layer + 4]

    HW = x_ref.shape[-1]

    # Zero the scratch: the halo of `pact` supplies the conv's SAME padding,
    # and not-yet-written rows of `stacked` must be finite (their matching
    # weight columns are zero).
    pact_ref[...] = jnp.zeros_like(pact_ref)
    stacked_ref[...] = jnp.zeros_like(stacked_ref)

    x = x_ref[0]                     # (C, HW)  f32
    wmask = wmask_ref[...]           # (3, HW)

    new = x                          # channels produced by the previous stage
    row_off = 0                      # global channel offset of `new`
    for layer in range(num_layer):
        nrows = new.shape[0]
        # Publish the new channels into the padded activation buffer.
        pact_ref[pl.ds(row_off, nrows), pl.ds(_LANE_PAD, HW)] = new
        # Append their 9 shifted/masked copies to the stacked matmul operand.
        for t, (dy, dx) in enumerate(_TAPS):
            s = dy * W + dx
            win = pact_ref[pl.ds(row_off, nrows), pl.ds(_LANE_PAD + s, HW)]
            if dx != 0:   # row-wrap along W must be masked; dy handled by halo
                win = win * wmask[dx + 1:dx + 2, :]
            stacked_ref[pl.ds(t * cpad + row_off, nrows), :] = win
        row_off += nrows

        # One MXU matmul per dense layer: K = 9*cpad covers all taps/channels.
        w = layer_refs[2 * layer][...]          # (growth, 9*cpad)
        b = layer_refs[2 * layer + 1][...]      # (growth, 1)
        y = jnp.dot(w, stacked_ref[...], preferred_element_type=jnp.float32) + b
        new = _apply_act(y, activation)

    # Publish the last layer's output, then 1x1 conv + bias + residual.
    pact_ref[pl.ds(row_off, new.shape[0]), pl.ds(_LANE_PAD, HW)] = new
    act = pact_ref[:, pl.ds(_LANE_PAD, HW)]     # (C_total, HW)
    out = (jnp.dot(w1_ref[...], act, preferred_element_type=jnp.float32)
           + b1_ref[...] + x)
    o_ref[0] = out.astype(o_ref.dtype)


# ----------------------------------------------------------------------------
# Host-side packing helpers + pallas_call wrapper
# ----------------------------------------------------------------------------
def _pack_conv3x3_weight(w_hwio, cpad):
    """HWIO (3,3,Cin,Cout) -> (Cout, 9*cpad); column = tap*cpad + in_channel."""
    kh, kw, cin, cout = w_hwio.shape
    wk = jnp.transpose(w_hwio, (3, 0, 1, 2)).reshape(cout, kh * kw, cin)
    wp = jnp.zeros((cout, kh * kw, cpad), w_hwio.dtype).at[:, :, :cin].set(wk)
    return wp.reshape(cout, kh * kw * cpad)


def _make_col_masks(H, W):
    """(3, H*W) f32 masks: mask[dx+1, i] = 1 iff column (i % W) + dx is valid."""
    w_idx = np.arange(H * W) % W
    m = np.stack([((w_idx + dx >= 0) & (w_idx + dx < W)).astype(np.float32)
                  for dx in (-1, 0, 1)], axis=0)
    return jnp.asarray(m)


def rdb_forward_nchw(x_nchw, params, activation='relu'):
    """Mirrors RDB.forward; accepts/returns PyTorch-style NCHW."""
    N, C, H, W = x_nchw.shape
    HW = H * W
    num_layer = len(params['dense'])
    growth = params['dense'][0][0].shape[-1] if num_layer else 0
    c_total = C + num_layer * growth
    cin_last = C + (num_layer - 1) * growth if num_layer else C
    cpad = _round_up(max(cin_last, 1), 8)

    # NCHW is already channel-major: a reshape (no transpose) gives (C, H*W).
    x_flat = x_nchw.reshape(N, C, HW).astype(jnp.float32)
    col_masks = _make_col_masks(H, W)

    def _const_spec(arr):
        nd = arr.ndim
        return pl.BlockSpec(arr.shape, lambda n: (0,) * nd)

    inputs = [x_flat, col_masks]
    in_specs = [pl.BlockSpec((1, C, HW), lambda n: (n, 0, 0)),
                _const_spec(col_masks)]
    for w, b in params['dense']:
        wk = _pack_conv3x3_weight(w, cpad)
        bk = b.reshape(-1, 1)
        inputs += [wk, bk]
        in_specs += [_const_spec(wk), _const_spec(bk)]
    w1k = jnp.transpose(params['w1x1'])           # (C, C_total)
    b1k = params['b1x1'].reshape(-1, 1)
    inputs += [w1k, b1k]
    in_specs += [_const_spec(w1k), _const_spec(b1k)]

    kernel = functools.partial(_rdb_fused_kernel, W=W, num_layer=num_layer,
                               cpad=cpad, activation=activation)

    out_flat = pl.pallas_call(
        kernel,
        out_shape=jax.ShapeDtypeStruct((N, C, HW), jnp.float32),
        grid=(N,),
        in_specs=in_specs,
        out_specs=pl.BlockSpec((1, C, HW), lambda n: (n, 0, 0)),
        scratch_shapes=[
            pltpu.VMEM((c_total, _LANE_PAD + HW + _LANE_PAD), jnp.float32),
            pltpu.VMEM((9 * cpad, HW), jnp.float32),
        ],
        compiler_params=pltpu.CompilerParams(
            dimension_semantics=("parallel",)),
    )(*inputs)
    return out_flat.reshape(N, C, H, W)


# ----------------------------------------------------------------------------
# Parameters + pure-JAX reference
# ----------------------------------------------------------------------------
def init_rdb_params(key, in_channels, growth_rate, num_layer):
    params = {'dense': []}
    c = in_channels
    for _ in range(num_layer):
        key, kw_, kb_ = jax.random.split(key, 3)
        w = jax.random.normal(kw_, (3, 3, c, growth_rate), jnp.float32) * 0.05
        b = jax.random.normal(kb_, (growth_rate,), jnp.float32) * 0.05
        params['dense'].append((w, b))
        c += growth_rate
    key, kw_, kb_ = jax.random.split(key, 3)
    params['w1x1'] = jax.random.normal(kw_, (c, in_channels), jnp.float32) * 0.05
    params['b1x1'] = jax.random.normal(kb_, (in_channels,), jnp.float32) * 0.05
    return params


def _ref_forward_nchw(x_nchw, params, activation='relu'):
    x = jnp.transpose(x_nchw, (0, 2, 3, 1))
    out = x
    dn = ('NHWC', 'HWIO', 'NHWC')
    for w, b in params['dense']:
        conv = lax.conv_general_dilated(out, w, (1, 1), 'SAME',
                                        dimension_numbers=dn) + b
        conv = jnp.maximum(conv, 0.0) if activation == 'relu' else jax.nn.gelu(
            conv, approximate=True)
        out = jnp.concatenate([out, conv], axis=-1)
    w1 = params['w1x1'][None, None]               # (1,1,C_total,C)
    y = lax.conv_general_dilated(out, w1, (1, 1), 'SAME',
                                 dimension_numbers=dn) + params['b1x1']
    y = y + x
    return jnp.transpose(y, (0, 3, 1, 2))


if __name__ == "__main__":
    # RDB(in_channels=4, growthRate=4, num_layer=3, activation='relu')
    in_channels, growth_rate, num_layer = 4, 4, 3
    N, H, W = 2, 16, 16

    key = jax.random.PRNGKey(0)
    key, kx = jax.random.split(key)
    x = jax.random.normal(kx, (N, in_channels, H, W), jnp.float32)  # NCHW

    params = init_rdb_params(key, in_channels, growth_rate, num_layer)

    fwd = jax.jit(functools.partial(rdb_forward_nchw, activation='relu'))
    out = jax.block_until_ready(fwd(x, params))

    ref = _ref_forward_nchw(x, params, activation='relu')
    assert out.shape == x.shape == (N, in_channels, H, W)
    assert jnp.allclose(out, ref, atol=1e-4, rtol=1e-4), "mismatch vs reference"

    print("KERNEL_OK")
</pallas_src>

<mosaic_0001>
module attributes {stable_mosaic.version = 11 : i64} {
  func.func @_rdb_fused_kernel(%arg0: i32, %arg1: memref<1x4x256xf32, #tpu.memory_space<vmem>>, %arg2: memref<3x256xf32, #tpu.memory_space<vmem>>, %arg3: memref<4x144xf32, #tpu.memory_space<vmem>>, %arg4: memref<4x1xf32, #tpu.memory_space<vmem>>, %arg5: memref<4x144xf32, #tpu.memory_space<vmem>>, %arg6: memref<4x1xf32, #tpu.memory_space<vmem>>, %arg7: memref<4x144xf32, #tpu.memory_space<vmem>>, %arg8: memref<4x1xf32, #tpu.memory_space<vmem>>, %arg9: memref<4x16xf32, #tpu.memory_space<vmem>>, %arg10: memref<4x1xf32, #tpu.memory_space<vmem>>, %arg11: memref<1x4x256xf32, #tpu.memory_space<vmem>>, %arg12: memref<16x512xf32, #tpu.memory_space<vmem>>, %arg13: memref<144x256xf32, #tpu.memory_space<vmem>>) attributes {dimension_semantics = [#tpu.dimension_semantics<parallel>], iteration_bounds = array<i64: 2>, scalar_prefetch = 0 : i64, scratch_operands = 2 : i64, tpu.core_type = #tpu.core_type<tc>, window_params = [{transform_indices = @transform_0, window_bounds = array<i64: 1, 4, 256>}, {pipeline_mode = #tpu.pipeline_mode<synchronous>, transform_indices = @transform_1, window_bounds = array<i64: 3, 256>}, {pipeline_mode = #tpu.pipeline_mode<synchronous>, transform_indices = @transform_2, window_bounds = array<i64: 4, 144>}, {pipeline_mode = #tpu.pipeline_mode<synchronous>, transform_indices = @transform_3, window_bounds = array<i64: 4, 1>}, {pipeline_mode = #tpu.pipeline_mode<synchronous>, transform_indices = @transform_4, window_bounds = array<i64: 4, 144>}, {pipeline_mode = #tpu.pipeline_mode<synchronous>, transform_indices = @transform_5, window_bounds = array<i64: 4, 1>}, {pipeline_mode = #tpu.pipeline_mode<synchronous>, transform_indices = @transform_6, window_bounds = array<i64: 4, 144>}, {pipeline_mode = #tpu.pipeline_mode<synchronous>, transform_indices = @transform_7, window_bounds = array<i64: 4, 1>}, {pipeline_mode = #tpu.pipeline_mode<synchronous>, transform_indices = @transform_8, window_bounds = array<i64: 4, 16>}, {pipeline_mode = #tpu.pipeline_mode<synchronous>, transform_indices = @transform_9, window_bounds = array<i64: 4, 1>}, {transform_indices = @transform_10, window_bounds = array<i64: 1, 4, 256>}]} {
    %cst = arith.constant 0.000000e+00 : f32
    %0 = vector.broadcast %cst : f32 to vector<16x512xf32>
    %c0 = arith.constant 0 : index
    %c0_0 = arith.constant 0 : index
    %1 = vector.load %arg12[%c0, %c0_0] : memref<16x512xf32, #tpu.memory_space<vmem>>, vector<16x512xf32>
    tpu.vector_store %arg12[%c0, %c0_0], %0 {strides = array<i32>} : memref<16x512xf32, #tpu.memory_space<vmem>>, vector<16x512xf32>,
    %cst_1 = arith.constant 0.000000e+00 : f32
    %2 = vector.broadcast %cst_1 : f32 to vector<144x256xf32>
    %c0_2 = arith.constant 0 : index
    %c0_3 = arith.constant 0 : index
    %3 = vector.load %arg13[%c0_2, %c0_3] : memref<144x256xf32, #tpu.memory_space<vmem>>, vector<144x256xf32>
    tpu.vector_store %arg13[%c0_2, %c0_3], %2 {strides = array<i32>} : memref<144x256xf32, #tpu.memory_space<vmem>>, vector<144x256xf32>,
    %c0_4 = arith.constant 0 : index
    %c0_5 = arith.constant 0 : index
    %c0_6 = arith.constant 0 : index
    %4 = vector.load %arg1[%c0_4, %c0_5, %c0_6] : memref<1x4x256xf32, #tpu.memory_space<vmem>>, vector<1x4x256xf32>
    %5 = vector.shape_cast %4 : vector<1x4x256xf32> to vector<4x256xf32>
    %c0_7 = arith.constant 0 : index
    %c0_8 = arith.constant 0 : index
    %6 = vector.load %arg2[%c0_7, %c0_8] : memref<3x256xf32, #tpu.memory_space<vmem>>, vector<3x256xf32>
    %c0_9 = arith.constant 0 : index
    %c128 = arith.constant 128 : index
    %7 = vector.load %arg12[%c0_9, %c128] : memref<16x512xf32, #tpu.memory_space<vmem>>, vector<4x256xf32>
    tpu.vector_store %arg12[%c0_9, %c128], %5 {strides = array<i32>} : memref<16x512xf32, #tpu.memory_space<vmem>>, vector<4x256xf32>,
    %c0_10 = arith.constant 0 : index
    %c111 = arith.constant 111 : index
    %8 = vector.load %arg12[%c0_10, %c111] : memref<16x512xf32, #tpu.memory_space<vmem>>, vector<4x256xf32>
    %9 = vector.extract_strided_slice %6 {offsets = [0, 0], sizes = [1, 256], strides = [1, 1]} : vector<3x256xf32> to vector<1x256xf32>
    %10 = vector.broadcast %9 : vector<1x256xf32> to vector<4x256xf32>
    %11 = arith.mulf %8, %10 : vector<4x256xf32>
    %c0_11 = arith.constant 0 : index
    %c0_12 = arith.constant 0 : index
    %12 = vector.load %arg13[%c0_11, %c0_12] : memref<144x256xf32, #tpu.memory_space<vmem>>, vector<4x256xf32>
    tpu.vector_store %arg13[%c0_11, %c0_12], %11 {strides = array<i32>} : memref<144x256xf32, #tpu.memory_space<vmem>>, vector<4x256xf32>,
    %c0_13 = arith.constant 0 : index
    %c112 = arith.constant 112 : index
    %13 = vector.load %arg12[%c0_13, %c112] : memref<16x512xf32, #tpu.memory_space<vmem>>, vector<4x256xf32>
    %c16 = arith.constant 16 : index
    %c0_14 = arith.constant 0 : index
    %14 = vector.load %arg13[%c16, %c0_14] : memref<144x256xf32, #tpu.memory_space<vmem>>, vector<4x256xf32>
    tpu.vector_store %arg13[%c16, %c0_14], %13 {strides = array<i32>} : memref<144x256xf32, #tpu.memory_space<vmem>>, vector<4x256xf32>,
    %c0_15 = arith.constant 0 : index
    %c113 = arith.constant 113 : index
    %15 = vector.load %arg12[%c0_15, %c113] : memref<16x512xf32, #tpu.memory_space<vmem>>, vector<4x256xf32>
    %16 = vector.extract_strided_slice %6 {offsets = [2, 0], sizes = [1, 256], strides = [1, 1]} : vector<3x256xf32> to vector<1x256xf32>
    %17 = vector.broadcast %16 : vector<1x256xf32> to vector<4x256xf32>
    %18 = arith.mulf %15, %17 : vector<4x256xf32>
    %c32 = arith.constant 32 : index
    %c0_16 = arith.constant 0 : index
    %19 = vector.load %arg13[%c32, %c0_16] : memref<144x256xf32, #tpu.memory_space<vmem>>, vector<4x256xf32>
    tpu.vector_store %arg13[%c32, %c0_16], %18 {strides = array<i32>} : memref<144x256xf32, #tpu.memory_space<vmem>>, vector<4x256xf32>,
    %c0_17 = arith.constant 0 : index
    %c127 = arith.constant 127 : index
    %20 = vector.load %arg12[%c0_17, %c127] : memref<16x512xf32, #tpu.memory_space<vmem>>, vector<4x256xf32>
    %21 = vector.extract_strided_slice %6 {offsets = [0, 0], sizes = [1, 256], strides = [1, 1]} : vector<3x256xf32> to vector<1x256xf32>
    %22 = vector.broadcast %21 : vector<1x256xf32> to vector<4x256xf32>
    %23 = arith.mulf %20, %22 : vector<4x256xf32>
    %c48 = arith.constant 48 : index
    %c0_18 = arith.constant 0 : index
    %24 = vector.load %arg13[%c48, %c0_18] : memref<144x256xf32, #tpu.memory_space<vmem>>, vector<4x256xf32>
    tpu.vector_store %arg13[%c48, %c0_18], %23 {strides = array<i32>} : memref<144x256xf32, #tpu.memory_space<vmem>>, vector<4x256xf32>,
    %c0_19 = arith.constant 0 : index
    %c128_20 = arith.constant 128 : index
    %25 = vector.load %arg12[%c0_19, %c128_20] : memref<16x512xf32, #tpu.memory_space<vmem>>, vector<4x256xf32>
    %c64 = arith.constant 64 : index
    %c0_21 = arith.constant 0 : index
    %26 = vector.load %arg13[%c64, %c0_21] : memref<144x256xf32, #tpu.memory_space<vmem>>, vector<4x256xf32>
    tpu.vector_store %arg13[%c64, %c0_21], %25 {strides = array<i32>} : memref<144x256xf32, #tpu.memory_space<vmem>>, vector<4x256xf32>,
    %c0_22 = arith.constant 0 : index
    %c129 = arith.constant 129 : index
    %27 = vector.load %arg12[%c0_22, %c129] : memref<16x512xf32, #tpu.memory_space<vmem>>, vector<4x256xf32>
    %28 = vector.extract_strided_slice %6 {offsets = [2, 0], sizes = [1, 256], strides = [1, 1]} : vector<3x256xf32> to vector<1x256xf32>
    %29 = vector.broadcast %28 : vector<1x256xf32> to vector<4x256xf32>
    %30 = arith.mulf %27, %29 : vector<4x256xf32>
    %c80 = arith.constant 80 : index
    %c0_23 = arith.constant 0 : index
    %31 = vector.load %arg13[%c80, %c0_23] : memref<144x256xf32, #tpu.memory_space<vmem>>, vector<4x256xf32>
    tpu.vector_store %arg13[%c80, %c0_23], %30 {strides = array<i32>} : memref<144x256xf32, #tpu.memory_space<vmem>>, vector<4x256xf32>,
    %c0_24 = arith.constant 0 : index
    %c143 = arith.constant 143 : index
    %32 = vector.load %arg12[%c0_24, %c143] : memref<16x512xf32, #tpu.memory_space<vmem>>, vector<4x256xf32>
    %33 = vector.extract_strided_slice %6 {offsets = [0, 0], sizes = [1, 256], strides = [1, 1]} : vector<3x256xf32> to vector<1x256xf32>
    %34 = vector.broadcast %33 : vector<1x256xf32> to vector<4x256xf32>
    %35 = arith.mulf %32, %34 : vector<4x256xf32>
    %c96 = arith.constant 96 : index
    %c0_25 = arith.constant 0 : index
    %36 = vector.load %arg13[%c96, %c0_25] : memref<144x256xf32, #tpu.memory_space<vmem>>, vector<4x256xf32>
    tpu.vector_store %arg13[%c96, %c0_25], %35 {strides = array<i32>} : memref<144x256xf32, #tpu.memory_space<vmem>>, vector<4x256xf32>,
    %c0_26 = arith.constant 0 : index
    %c144 = arith.constant 144 : index
    %37 = vector.load %arg12[%c0_26, %c144] : memref<16x512xf32, #tpu.memory_space<vmem>>, vector<4x256xf32>
    %c112_27 = arith.constant 112 : index
    %c0_28 = arith.constant 0 : index
    %38 = vector.load %arg13[%c112_27, %c0_28] : memref<144x256xf32, #tpu.memory_space<vmem>>, vector<4x256xf32>
    tpu.vector_store %arg13[%c112_27, %c0_28], %37 {strides = array<i32>} : memref<144x256xf32, #tpu.memory_space<vmem>>, vector<4x256xf32>,
    %c0_29 = arith.constant 0 : index
    %c145 = arith.constant 145 : index
    %39 = vector.load %arg12[%c0_29, %c145] : memref<16x512xf32, #tpu.memory_space<vmem>>, vector<4x256xf32>
    %40 = vector.extract_strided_slice %6 {offsets = [2, 0], sizes = [1, 256], strides = [1, 1]} : vector<3x256xf32> to vector<1x256xf32>
    %41 = vector.broadcast %40 : vector<1x256xf32> to vector<4x256xf32>
    %42 = arith.mulf %39, %41 : vector<4x256xf32>
    %c128_30 = arith.constant 128 : index
    %c0_31 = arith.constant 0 : index
    %43 = vector.load %arg13[%c128_30, %c0_31] : memref<144x256xf32, #tpu.memory_space<vmem>>, vector<4x256xf32>
    tpu.vector_store %arg13[%c128_30, %c0_31], %42 {strides = array<i32>} : memref<144x256xf32, #tpu.memory_space<vmem>>, vector<4x256xf32>,
    %c0_32 = arith.constant 0 : index
    %c0_33 = arith.constant 0 : index
    %44 = vector.load %arg3[%c0_32, %c0_33] : memref<4x144xf32, #tpu.memory_space<vmem>>, vector<4x144xf32>
    %c0_34 = arith.constant 0 : index
    %c0_35 = arith.constant 0 : index
    %45 = vector.load %arg4[%c0_34, %c0_35] : memref<4x1xf32, #tpu.memory_space<vmem>>, vector<4x1xf32>
    %c0_36 = arith.constant 0 : index
    %c0_37 = arith.constant 0 : index
    %46 = vector.load %arg13[%c0_36, %c0_37] : memref<144x256xf32, #tpu.memory_space<vmem>>, vector<144x256xf32>
    %cst_38 = arith.constant dense<0.000000e+00> : vector<4x256xf32>
    %47 = tpu.matmul %44, %46, %cst_38 {dimension_numbers = #tpu.dot_dimension_numbers<[1], [0], [0], [1], [0, 0, 1, 1], [], []>} : vector<4x144xf32>, vector<144x256xf32>, vector<4x256xf32> -> vector<4x256xf32>
    %48 = vector.broadcast %45 : vector<4x1xf32> to vector<4x256xf32>
    %49 = arith.addf %47, %48 : vector<4x256xf32>
    %cst_39 = arith.constant 0.000000e+00 : f32
    %50 = vector.broadcast %cst_39 : f32 to vector<4x256xf32>
    %51 = arith.maximumf %49, %50 : vector<4x256xf32>
    %c4 = arith.constant 4 : index
    %c128_40 = arith.constant 128 : index
    %52 = vector.load %arg12[%c4, %c128_40] : memref<16x512xf32, #tpu.memory_space<vmem>>, vector<4x256xf32>
    tpu.vector_store %arg12[%c4, %c128_40], %51 {strides = array<i32>} : memref<16x512xf32, #tpu.memory_space<vmem>>, vector<4x256xf32>,
    %c4_41 = arith.constant 4 : index
    %c111_42 = arith.constant 111 : index
    %53 = vector.load %arg12[%c4_41, %c111_42] : memref<16x512xf32, #tpu.memory_space<vmem>>, vector<4x256xf32>
    %54 = vector.extract_strided_slice %6 {offsets = [0, 0], sizes = [1, 256], strides = [1, 1]} : vector<3x256xf32> to vector<1x256xf32>
    %55 = vector.broadcast %54 : vector<1x256xf32> to vector<4x256xf32>
    %56 = arith.mulf %53, %55 : vector<4x256xf32>
    %c4_43 = arith.constant 4 : index
    %c0_44 = arith.constant 0 : index
    %57 = vector.load %arg13[%c4_43, %c0_44] : memref<144x256xf32, #tpu.memory_space<vmem>>, vector<4x256xf32>
    tpu.vector_store %arg13[%c4_43, %c0_44], %56 {strides = array<i32>} : memref<144x256xf32, #tpu.memory_space<vmem>>, vector<4x256xf32>,
    %c4_45 = arith.constant 4 : index
    %c112_46 = arith.constant 112 : index
    %58 = vector.load %arg12[%c4_45, %c112_46] : memref<16x512xf32, #tpu.memory_space<vmem>>, vector<4x256xf32>
    %c20 = arith.constant 20 : index
    %c0_47 = arith.constant 0 : index
    %59 = vector.load %arg13[%c20, %c0_47] : memref<144x256xf32, #tpu.memory_space<vmem>>, vector<4x256xf32>
    tpu.vector_store %arg13[%c20, %c0_47], %58 {strides = array<i32>} : memref<144x256xf32, #tpu.memory_space<vmem>>, vector<4x256xf32>,
    %c4_48 = arith.constant 4 : index
    %c113_49 = arith.constant 113 : index
    %60 = vector.load %arg12[%c4_48, %c113_49] : memref<16x512xf32, #tpu.memory_space<vmem>>, vector<4x256xf32>
    %61 = vector.extract_strided_slice %6 {offsets = [2, 0], sizes = [1, 256], strides = [1, 1]} : vector<3x256xf32> to vector<1x256xf32>
    %62 = vector.broadcast %61 : vector<1x256xf32> to vector<4x256xf32>
    %63 = arith.mulf %60, %62 : vector<4x256xf32>
    %c36 = arith.constant 36 : index
    %c0_50 = arith.constant 0 : index
    %64 = vector.load %arg13[%c36, %c0_50] : memref<144x256xf32, #tpu.memory_space<vmem>>, vector<4x256xf32>
    tpu.vector_store %arg13[%c36, %c0_50], %63 {strides = array<i32>} : memref<144x256xf32, #tpu.memory_space<vmem>>, vector<4x256xf32>,
    %c4_51 = arith.constant 4 : index
    %c127_52 = arith.constant 127 : index
    %65 = vector.load %arg12[%c4_51, %c127_52] : memref<16x512xf32, #tpu.memory_space<vmem>>, vector<4x256xf32>
    %66 = vector.extract_strided_slice %6 {offsets = [0, 0], sizes = [1, 256], strides = [1, 1]} : vector<3x256xf32> to vector<1x256xf32>
    %67 = vector.broadcast %66 : vector<1x256xf32> to vector<4x256xf32>
    %68 = arith.mulf %65, %67 : vector<4x256xf32>
    %c52 = arith.constant 52 : index
    %c0_53 = arith.constant 0 : index
    %69 = vector.load %arg13[%c52, %c0_53] : memref<144x256xf32, #tpu.memory_space<vmem>>, vector<4x256xf32>
    tpu.vector_store %arg13[%c52, %c0_53], %68 {strides = array<i32>} : memref<144x256xf32, #tpu.memory_space<vmem>>, vector<4x256xf32>,
    %c4_54 = arith.constant 4 : index
    %c128_55 = arith.constant 128 : index
    %70 = vector.load %arg12[%c4_54, %c128_55] : memref<16x512xf32, #tpu.memory_space<vmem>>, vector<4x256xf32>
    %c68 = arith.constant 68 : index
    %c0_56 = arith.constant 0 : index
    %71 = vector.load %arg13[%c68, %c0_56] : memref<144x256xf32, #tpu.memory_space<vmem>>, vector<4x256xf32>
    tpu.vector_store %arg13[%c68, %c0_56], %70 {strides = array<i32>} : memref<144x256xf32, #tpu.memory_space<vmem>>, vector<4x256xf32>,
    %c4_57 = arith.constant 4 : index
    %c129_58 = arith.constant 129 : index
    %72 = vector.load %arg12[%c4_57, %c129_58] : memref<16x512xf32, #tpu.memory_space<vmem>>, vector<4x256xf32>
    %73 = vector.extract_strided_slice %6 {offsets = [2, 0], sizes = [1, 256], strides = [1, 1]} : vector<3x256xf32> to vector<1x256xf32>
    %74 = vector.broadcast %73 : vector<1x256xf32> to vector<4x256xf32>
    %75 = arith.mulf %72, %74 : vector<4x256xf32>
    %c84 = arith.constant 84 : index
    %c0_59 = arith.constant 0 : index
    %76 = vector.load %arg13[%c84, %c0_59] : memref<144x256xf32, #tpu.memory_space<vmem>>, vector<4x256xf32>
    tpu.vector_store %arg13[%c84, %c0_59], %75 {strides = array<i32>} : memref<144x256xf32, #tpu.memory_space<vmem>>, vector<4x256xf32>,
    %c4_60 = arith.constant 4 : index
    %c143_61 = arith.constant 143 : index
    %77 = vector.load %arg12[%c4_60, %c143_61] : memref<16x512xf32, #tpu.memory_space<vmem>>, vector<4x256xf32>
    %78 = vector.extract_strided_slice %6 {offsets = [0, 0], sizes = [1, 256], strides = [1, 1]} : vector<3x256xf32> to vector<1x256xf32>
    %79 = vector.broadcast %78 : vector<1x256xf32> to vector<4x256xf32>
    %80 = arith.mulf %77, %79 : vector<4x256xf32>
    %c100 = arith.constant 100 : index
    %c0_62 = arith.constant 0 : index
    %81 = vector.load %arg13[%c100, %c0_62] : memref<144x256xf32, #tpu.memory_space<vmem>>, vector<4x256xf32>
    tpu.vector_store %arg13[%c100, %c0_62], %80 {strides = array<i32>} : memref<144x256xf32, #tpu.memory_space<vmem>>, vector<4x256xf32>,
    %c4_63 = arith.constant 4 : index
    %c144_64 = arith.constant 144 : index
    %82 = vector.load %arg12[%c4_63, %c144_64] : memref<16x512xf32, #tpu.memory_space<vmem>>, vector<4x256xf32>
    %c116 = arith.constant 116 : index
    %c0_65 = arith.constant 0 : index
    %83 = vector.load %arg13[%c116, %c0_65] : memref<144x256xf32, #tpu.memory_space<vmem>>, vector<4x256xf32>
    tpu.vector_store %arg13[%c116, %c0_65], %82 {strides = array<i32>} : memref<144x256xf32, #tpu.memory_space<vmem>>, vector<4x256xf32>,
    %c4_66 = arith.constant 4 : index
    %c145_67 = arith.constant 145 : index
    %84 = vector.load %arg12[%c4_66, %c145_67] : memref<16x512xf32, #tpu.memory_space<vmem>>, vector<4x256xf32>
    %85 = vector.extract_strided_slice %6 {offsets = [2, 0], sizes = [1, 256], strides = [1, 1]} : vector<3x256xf32> to vector<1x256xf32>
    %86 = vector.broadcast %85 : vector<1x256xf32> to vector<4x256xf32>
    %87 = arith.mulf %84, %86 : vector<4x256xf32>
    %c132 = arith.constant 132 : index
    %c0_68 = arith.constant 0 : index
    %88 = vector.load %arg13[%c132, %c0_68] : memref<144x256xf32, #tpu.memory_space<vmem>>, vector<4x256xf32>
    tpu.vector_store %arg13[%c132, %c0_68], %87 {strides = array<i32>} : memref<144x256xf32, #tpu.memory_space<vmem>>, vector<4x256xf32>,
    %c0_69 = arith.constant 0 : index
    %c0_70 = arith.constant 0 : index
    %89 = vector.load %arg5[%c0_69, %c0_70] : memref<4x144xf32, #tpu.memory_space<vmem>>, vector<4x144xf32>
    %c0_71 = arith.constant 0 : index
    %c0_72 = arith.constant 0 : index
    %90 = vector.load %arg6[%c0_71, %c0_72] : memref<4x1xf32, #tpu.memory_space<vmem>>, vector<4x1xf32>
    %c0_73 = arith.constant 0 : index
    %c0_74 = arith.constant 0 : index
    %91 = vector.load %arg13[%c0_73, %c0_74] : memref<144x256xf32, #tpu.memory_space<vmem>>, vector<144x256xf32>
    %cst_75 = arith.constant dense<0.000000e+00> : vector<4x256xf32>
    %92 = tpu.matmul %89, %91, %cst_75 {dimension_numbers = #tpu.dot_dimension_numbers<[1], [0], [0], [1], [0, 0, 1, 1], [], []>} : vector<4x144xf32>, vector<144x256xf32>, vector<4x256xf32> -> vector<4x256xf32>
    %93 = vector.broadcast %90 : vector<4x1xf32> to vector<4x256xf32>
    %94 = arith.addf %92, %93 : vector<4x256xf32>
    %cst_76 = arith.constant 0.000000e+00 : f32
    %95 = vector.broadcast %cst_76 : f32 to vector<4x256xf32>
    %96 = arith.maximumf %94, %95 : vector<4x256xf32>
    %c8 = arith.constant 8 : index
    %c128_77 = arith.constant 128 : index
    %97 = vector.load %arg12[%c8, %c128_77] : memref<16x512xf32, #tpu.memory_space<vmem>>, vector<4x256xf32>
    tpu.vector_store %arg12[%c8, %c128_77], %96 {strides = array<i32>} : memref<16x512xf32, #tpu.memory_space<vmem>>, vector<4x256xf32>,
    %c8_78 = arith.constant 8 : index
    %c111_79 = arith.constant 111 : index
    %98 = vector.load %arg12[%c8_78, %c111_79] : memref<16x512xf32, #tpu.memory_space<vmem>>, vector<4x256xf32>
    %99 = vector.extract_strided_slice %6 {offsets = [0, 0], sizes = [1, 256], strides = [1, 1]} : vector<3x256xf32> to vector<1x256xf32>
    %100 = vector.broadcast %99 : vector<1x256xf32> to vector<4x256xf32>
    %101 = arith.mulf %98, %100 : vector<4x256xf32>
    %c8_80 = arith.constant 8 : index
    %c0_81 = arith.constant 0 : index
    %102 = vector.load %arg13[%c8_80, %c0_81] : memref<144x256xf32, #tpu.memory_space<vmem>>, vector<4x256xf32>
    tpu.vector_store %arg13[%c8_80, %c0_81], %101 {strides = array<i32>} : memref<144x256xf32, #tpu.memory_space<vmem>>, vector<4x256xf32>,
    %c8_82 = arith.constant 8 : index
    %c112_83 = arith.constant 112 : index
    %103 = vector.load %arg12[%c8_82, %c112_83] : memref<16x512xf32, #tpu.memory_space<vmem>>, vector<4x256xf32>
    %c24 = arith.constant 24 : index
    %c0_84 = arith.constant 0 : index
    %104 = vector.load %arg13[%c24, %c0_84] : memref<144x256xf32, #tpu.memory_space<vmem>>, vector<4x256xf32>
    tpu.vector_store %arg13[%c24, %c0_84], %103 {strides = array<i32>} : memref<144x256xf32, #tpu.memory_space<vmem>>, vector<4x256xf32>,
    %c8_85 = arith.constant 8 : index
    %c113_86 = arith.constant 113 : index
    %105 = vector.load %arg12[%c8_85, %c113_86] : memref<16x512xf32, #tpu.memory_space<vmem>>, vector<4x256xf32>
    %106 = vector.extract_strided_slice %6 {offsets = [2, 0], sizes = [1, 256], strides = [1, 1]} : vector<3x256xf32> to vector<1x256xf32>
    %107 = vector.broadcast %106 : vector<1x256xf32> to vector<4x256xf32>
    %108 = arith.mulf %105, %107 : vector<4x256xf32>
    %c40 = arith.constant 40 : index
    %c0_87 = arith.constant 0 : index
    %109 = vector.load %arg13[%c40, %c0_87] : memref<144x256xf32, #tpu.memory_space<vmem>>, vector<4x256xf32>
    tpu.vector_store %arg13[%c40, %c0_87], %108 {strides = array<i32>} : memref<144x256xf32, #tpu.memory_space<vmem>>, vector<4x256xf32>,
    %c8_88 = arith.constant 8 : index
    %c127_89 = arith.constant 127 : index
    %110 = vector.load %arg12[%c8_88, %c127_89] : memref<16x512xf32, #tpu.memory_space<vmem>>, vector<4x256xf32>
    %111 = vector.extract_strided_slice %6 {offsets = [0, 0], sizes = [1, 256], strides = [1, 1]} : vector<3x256xf32> to vector<1x256xf32>
    %112 = vector.broadcast %111 : vector<1x256xf32> to vector<4x256xf32>
    %113 = arith.mulf %110, %112 : vector<4x256xf32>
    %c56 = arith.constant 56 : index
    %c0_90 = arith.constant 0 : index
    %114 = vector.load %arg13[%c56, %c0_90] : memref<144x256xf32, #tpu.memory_space<vmem>>, vector<4x256xf32>
    tpu.vector_store %arg13[%c56, %c0_90], %113 {strides = array<i32>} : memref<144x256xf32, #tpu.memory_space<vmem>>, vector<4x256xf32>,
    %c8_91 = arith.constant 8 : index
    %c128_92 = arith.constant 128 : index
    %115 = vector.load %arg12[%c8_91, %c128_92] : memref<16x512xf32, #tpu.memory_space<vmem>>, vector<4x256xf32>
    %c72 = arith.constant 72 : index
    %c0_93 = arith.constant 0 : index
    %116 = vector.load %arg13[%c72, %c0_93] : memref<144x256xf32, #tpu.memory_space<vmem>>, vector<4x256xf32>
    tpu.vector_store %arg13[%c72, %c0_93], %115 {strides = array<i32>} : memref<144x256xf32, #tpu.memory_space<vmem>>, vector<4x256xf32>,
    %c8_94 = arith.constant 8 : index
    %c129_95 = arith.constant 129 : index
    %117 = vector.load %arg12[%c8_94, %c129_95] : memref<16x512xf32, #tpu.memory_space<vmem>>, vector<4x256xf32>
    %118 = vector.extract_strided_slice %6 {offsets = [2, 0], sizes = [1, 256], strides = [1, 1]} : vector<3x256xf32> to vector<1x256xf32>
    %119 = vector.broadcast %118 : vector<1x256xf32> to vector<4x256xf32>
    %120 = arith.mulf %117, %119 : vector<4x256xf32>
    %c88 = arith.constant 88 : index
    %c0_96 = arith.constant 0 : index
    %121 = vector.load %arg13[%c88, %c0_96] : memref<144x256xf32, #tpu.memory_space<vmem>>, vector<4x256xf32>
    tpu.vector_store %arg13[%c88, %c0_96], %120 {strides = array<i32>} : memref<144x256xf32, #tpu.memory_space<vmem>>, vector<4x256xf32>,
    %c8_97 = arith.constant 8 : index
    %c143_98 = arith.constant 143 : index
    %122 = vector.load %arg12[%c8_97, %c143_98] : memref<16x512xf32, #tpu.memory_space<vmem>>, vector<4x256xf32>
    %123 = vector.extract_strided_slice %6 {offsets = [0, 0], sizes = [1, 256], strides = [1, 1]} : vector<3x256xf32> to vector<1x256xf32>
    %124 = vector.broadcast %123 : vector<1x256xf32> to vector<4x256xf32>
    %125 = arith.mulf %122, %124 : vector<4x256xf32>
    %c104 = arith.constant 104 : index
    %c0_99 = arith.constant 0 : index
    %126 = vector.load %arg13[%c104, %c0_99] : memref<144x256xf32, #tpu.memory_space<vmem>>, vector<4x256xf32>
    tpu.vector_store %arg13[%c104, %c0_99], %125 {strides = array<i32>} : memref<144x256xf32, #tpu.memory_space<vmem>>, vector<4x256xf32>,
    %c8_100 = arith.constant 8 : index
    %c144_101 = arith.constant 144 : index
    %127 = vector.load %arg12[%c8_100, %c144_101] : memref<16x512xf32, #tpu.memory_space<vmem>>, vector<4x256xf32>
    %c120 = arith.constant 120 : index
    %c0_102 = arith.constant 0 : index
    %128 = vector.load %arg13[%c120, %c0_102] : memref<144x256xf32, #tpu.memory_space<vmem>>, vector<4x256xf32>
    tpu.vector_store %arg13[%c120, %c0_102], %127 {strides = array<i32>} : memref<144x256xf32, #tpu.memory_space<vmem>>, vector<4x256xf32>,
    %c8_103 = arith.constant 8 : index
    %c145_104 = arith.constant 145 : index
    %129 = vector.load %arg12[%c8_103, %c145_104] : memref<16x512xf32, #tpu.memory_space<vmem>>, vector<4x256xf32>
    %130 = vector.extract_strided_slice %6 {offsets = [2, 0], sizes = [1, 256], strides = [1, 1]} : vector<3x256xf32> to vector<1x256xf32>
    %131 = vector.broadcast %130 : vector<1x256xf32> to vector<4x256xf32>
    %132 = arith.mulf %129, %131 : vector<4x256xf32>
    %c136 = arith.constant 136 : index
    %c0_105 = arith.constant 0 : index
    %133 = vector.load %arg13[%c136, %c0_105] : memref<144x256xf32, #tpu.memory_space<vmem>>, vector<4x256xf32>
    tpu.vector_store %arg13[%c136, %c0_105], %132 {strides = array<i32>} : memref<144x256xf32, #tpu.memory_space<vmem>>, vector<4x256xf32>,
    %c0_106 = arith.constant 0 : index
    %c0_107 = arith.constant 0 : index
    %134 = vector.load %arg7[%c0_106, %c0_107] : memref<4x144xf32, #tpu.memory_space<vmem>>, vector<4x144xf32>
    %c0_108 = arith.constant 0 : index
    %c0_109 = arith.constant 0 : index
    %135 = vector.load %arg8[%c0_108, %c0_109] : memref<4x1xf32, #tpu.memory_space<vmem>>, vector<4x1xf32>
    %c0_110 = arith.constant 0 : index
    %c0_111 = arith.constant 0 : index
    %136 = vector.load %arg13[%c0_110, %c0_111] : memref<144x256xf32, #tpu.memory_space<vmem>>, vector<144x256xf32>
    %cst_112 = arith.constant dense<0.000000e+00> : vector<4x256xf32>
    %137 = tpu.matmul %134, %136, %cst_112 {dimension_numbers = #tpu.dot_dimension_numbers<[1], [0], [0], [1], [0, 0, 1, 1], [], []>} : vector<4x144xf32>, vector<144x256xf32>, vector<4x256xf32> -> vector<4x256xf32>
    %138 = vector.broadcast %135 : vector<4x1xf32> to vector<4x256xf32>
    %139 = arith.addf %137, %138 : vector<4x256xf32>
    %cst_113 = arith.constant 0.000000e+00 : f32
    %140 = vector.broadcast %cst_113 : f32 to vector<4x256xf32>
    %141 = arith.maximumf %139, %140 : vector<4x256xf32>
    %c12 = arith.constant 12 : index
    %c128_114 = arith.constant 128 : index
    %142 = vector.load %arg12[%c12, %c128_114] : memref<16x512xf32, #tpu.memory_space<vmem>>, vector<4x256xf32>
    tpu.vector_store %arg12[%c12, %c128_114], %141 {strides = array<i32>} : memref<16x512xf32, #tpu.memory_space<vmem>>, vector<4x256xf32>,
    %c0_115 = arith.constant 0 : index
    %c128_116 = arith.constant 128 : index
    %143 = vector.load %arg12[%c0_115, %c128_116] : memref<16x512xf32, #tpu.memory_space<vmem>>, vector<16x256xf32>
    %c0_117 = arith.constant 0 : index
    %c0_118 = arith.constant 0 : index
    %144 = vector.load %arg9[%c0_117, %c0_118] : memref<4x16xf32, #tpu.memory_space<vmem>>, vector<4x16xf32>
    %cst_119 = arith.constant dense<0.000000e+00> : vector<4x256xf32>
    %145 = tpu.matmul %144, %143, %cst_119 {dimension_numbers = #tpu.dot_dimension_numbers<[1], [0], [0], [1], [0, 0, 1, 1], [], []>} : vector<4x16xf32>, vector<16x256xf32>, vector<4x256xf32> -> vector<4x256xf32>
    %c0_120 = arith.constant 0 : index
    %c0_121 = arith.constant 0 : index
    %146 = vector.load %arg10[%c0_120, %c0_121] : memref<4x1xf32, #tpu.memory_space<vmem>>, vector<4x1xf32>
    %147 = vector.broadcast %146 : vector<4x1xf32> to vector<4x256xf32>
    %148 = arith.addf %145, %147 : vector<4x256xf32>
    %149 = arith.addf %148, %5 : vector<4x256xf32>
    %c0_122 = arith.constant 0 : index
    %c0_123 = arith.constant 0 : index
    %c0_124 = arith.constant 0 : index
    %150 = vector.load %arg11[%c0_122, %c0_123, %c0_124] : memref<1x4x256xf32, #tpu.memory_space<vmem>>, vector<1x4x256xf32>
    %151 = vector.shape_cast %150 : vector<1x4x256xf32> to vector<4x256xf32>
    %152 = vector.shape_cast %149 : vector<4x256xf32> to vector<1x4x256xf32>
    tpu.vector_store %arg11[%c0_122, %c0_123, %c0_124], %152 {strides = array<i32>} : memref<1x4x256xf32, #tpu.memory_space<vmem>>, vector<1x4x256xf32>,
    return
  }
  func.func @transform_0(%arg0: i32) -> (i32, i32, i32) {
    %c0_i32 = arith.constant 0 : i32
    %c0_i32_0 = arith.constant 0 : i32
    %c0_i32_1 = arith.constant 0 : i32
    return %arg0, %c0_i32, %c0_i32_0 : i32, i32, i32
  }
  func.func @transform_1(%arg0: i32) -> (i32, i32) {
    %c0_i32 = arith.constant 0 : i32
    %c0_i32_0 = arith.constant 0 : i32
    %c0_i32_1 = arith.constant 0 : i32
    return %c0_i32, %c0_i32_0 : i32, i32
  }
  func.func @transform_2(%arg0: i32) -> (i32, i32) {
    %c0_i32 = arith.constant 0 : i32
    %c0_i32_0 = arith.constant 0 : i32
    %c0_i32_1 = arith.constant 0 : i32
    return %c0_i32, %c0_i32_0 : i32, i32
  }
  func.func @transform_3(%arg0: i32) -> (i32, i32) {
    %c0_i32 = arith.constant 0 : i32
    %c0_i32_0 = arith.constant 0 : i32
    %c0_i32_1 = arith.constant 0 : i32
    return %c0_i32, %c0_i32_0 : i32, i32
  }
  func.func @transform_4(%arg0: i32) -> (i32, i32) {
    %c0_i32 = arith.constant 0 : i32
    %c0_i32_0 = arith.constant 0 : i32
    %c0_i32_1 = arith.constant 0 : i32
    return %c0_i32, %c0_i32_0 : i32, i32
  }
  func.func @transform_5(%arg0: i32) -> (i32, i32) {
    %c0_i32 = arith.constant 0 : i32
    %c0_i32_0 = arith.constant 0 : i32
    %c0_i32_1 = arith.constant 0 : i32
    return %c0_i32, %c0_i32_0 : i32, i32
  }
  func.func @transform_6(%arg0: i32) -> (i32, i32) {
    %c0_i32 = arith.constant 0 : i32
    %c0_i32_0 = arith.constant 0 : i32
    %c0_i32_1 = arith.constant 0 : i32
    return %c0_i32, %c0_i32_0 : i32, i32
  }
  func.func @transform_7(%arg0: i32) -> (i32, i32) {
    %c0_i32 = arith.constant 0 : i32
    %c0_i32_0 = arith.constant 0 : i32
    %c0_i32_1 = arith.constant 0 : i32
    return %c0_i32, %c0_i32_0 : i32, i32
  }
  func.func @transform_8(%arg0: i32) -> (i32, i32) {
    %c0_i32 = arith.constant 0 : i32
    %c0_i32_0 = arith.constant 0 : i32
    %c0_i32_1 = arith.constant 0 : i32
    return %c0_i32, %c0_i32_0 : i32, i32
  }
  func.func @transform_9(%arg0: i32) -> (i32, i32) {
    %c0_i32 = arith.constant 0 : i32
    %c0_i32_0 = arith.constant 0 : i32
    %c0_i32_1 = arith.constant 0 : i32
    return %c0_i32, %c0_i32_0 : i32, i32
  }
  func.func @transform_10(%arg0: i32) -> (i32, i32, i32) {
    %c0_i32 = arith.constant 0 : i32
    %c0_i32_0 = arith.constant 0 : i32
    %c0_i32_1 = arith.constant 0 : i32
    return %arg0, %c0_i32, %c0_i32_0 : i32, i32, i32
  }
}

</mosaic_0001>

<bundles_post_ra>
// kernel: rdb_forward_nchw.1
= control target key start
LH: loop header
LB: loop body
LE: loop exit
PB: predicated region body
PF: predicated region fallthrough
CT: control target
= control target key end

     0   :  { %s1645_s13 = smov 0   ;;  %s2122_s0 = inlined_call_operand.vmem [shape: f32[2,4,256], index: 0, kind: input, shape index: {}]   ;;  %s2123_s1 = inlined_call_operand.vmem [shape: f32[3,256], index: 1, kind: input, shape index: {}]   ;;  %s2124_s2 = inlined_call_operand.vmem [shape: f32[4,144], index: 2, kind: input, shape index: {}]   ;;  %s2125_s3 = inlined_call_operand.vmem [shape: f32[4,1], index: 3, kind: input, shape index: {}]   ;;  %s2126_s4 = inlined_call_operand.vmem [shape: f32[4,144], index: 4, kind: input, shape index: {}]   ;;  %s2127_s5 = inlined_call_operand.vmem [shape: f32[4,1], index: 5, kind: input, shape index: {}]   ;;  %s2128_s6 = inlined_call_operand.vmem [shape: f32[4,144], index: 6, kind: input, shape index: {}]   ;;  %s2129_s7 = inlined_call_operand.vmem [shape: f32[4,1], index: 7, kind: input, shape index: {}]   ;;  %s2130_s8 = inlined_call_operand.vmem [shape: f32[4,16], index: 8, kind: input, shape index: {}]   ;;  %s2131_s9 = inlined_call_operand.vmem [shape: f32[4,1], index: 9, kind: input, shape index: {}]   ;;  %s2132_s10 = inlined_call_operand.vmem [shape: f32[2,4,256], index: 10, kind: output, shape index: {}]  }
   0x1 LB: > { %s1531_s14 = sadd.s32 4294967295, %s1578_s13   ;;  %p1535_p0 = scmp.ge.s32.totalorder %s1578_s13, 1  ;;  %s1578_s13 = sphi %s1645_s13, %s20_s13  }
   0x2   : > { %p312_p1 = scmp.lt.s32.totalorder %s1578_s13, 3 }
   0x4   : > { %p313_p2 = pnand %p1535_p0, %p312_p1 }
   0x5   : > { %p350_p3 = scmp.lt.s32.totalorder (!%p313_p2), %s1531_s14, 1  ;;  %s1581_s21 = smov (!%p313_p2), 1  }
   0x6   : > { %316 = sbr.rel (%p313_p2) target bundleno = 1469 (0x5bd), region = 60  ;;  %s1582_s22 = smov (!%p313_p2), 15  }
   0x7   : > { %s1583_s23 = smov (!%p313_p2), 127   ;;  %s1584_s24 = smov (!%p313_p2), 113  }
   0x8   : > { %s1585_s25 = smov (!%p313_p2), 111   ;;  %s1586_s26 = smov (!%p313_p2), 17  }
   0x9   : > { %s1587_s27 = smov (!%p313_p2), 112   ;;  %s1589_s28 = smov (!%p313_p2), 16  }
   0xb   : > { %v415_v0 = vlaneseq  ;;  %v1580_v1 = vmov 0.0   ;;  %v405_v3 = vld [vmem:[%s2123_s1] sm:$0x77]  ;;  %s2134_s14 = smov (!%p350_p3, %s1531_s14), 1  ;;  %v1588_v21 = vmov 0   ;;  %vm526_vm0 = vcmask 121856  }
   0xc   : > { %362 = vst [vmem:[#allocation2 + $0x18] sm:$0xff] %v1580_v1  ;;  %360 = vst [vmem:[#allocation2 + $0x30] sm:$0xff] %v1580_v1  ;;  %721 = vmatprep.subr.mxu0 %v1580_v1  ;;  %1015 = vmatprep.subr.mxu1 %v1580_v1  ;;  %s1546_s17 = sshll.u32 %s2134_s14, 3  ;;  %vm557_vm1 = vcmask 7168   ;;  %vm540_vm2 = vcmask 1039360   ;;  %vm638_vm3 = vcmask 916480  }
   0xd   : > { %361 = vst [vmem:[#allocation2] sm:$0xff] %v1580_v1  ;;  %363 = vst [vmem:[#allocation2 + $0x10] sm:$0xff] %v1580_v1  ;;  %v416_v2 = vshrl.u32 %v415_v0, 7  ;;  %722 = vmatpush1.msra.mxu0 %v1580_v1  ;;  %1016 = vmatpush1.msra.mxu1 %v1580_v1  ;;  %s354_s20 = scalar_lea.vmem %s2122_s0, %s1546_s17  ;;  %vm509_vm4 = vcmask 924672   ;;  %vm456_vm5 = vcmask 138240   ;;  %vm439_vm6 = vcmask 908288   ;;  %s359_s30 = scalar_lea.vmem %s2132_s10, %s1546_s17 }
   0xe   : > { %364 = vst [vmem:[#allocation2 + $0x8] sm:$0xff] %v1580_v1  ;;  %365 = vst [vmem:[#allocation2 + $0x20] sm:$0xff] %v1580_v1  ;;  %v1716_v14 = vld [vmem:[%s354_s20] sm:$0xff]  ;;  %1566 = vset.pattern.permute.xlu0 %v1588_v21  ;;  %1567 = vset.pattern.permute.xlu1 %v1588_v21  ;;  %vm475_vm7 = vcmask 130048  }
   0xf   : > { %366 = vst [vmem:[#allocation2 + $0x28] sm:$0xff] %v1580_v1  ;;  %367 = vst [vmem:[#allocation2 + $0x38] sm:$0xff] %v1580_v1  ;;  %v487_v4 = vsub.s32 2, %v416_v2  ;;  %v417_v5 = vsub.s32 0, %v416_v2  ;;  %v491_v6 = vsub.s32 6, %v416_v2  ;;  %v421_v7 = vsub.s32 4, %v416_v2 }
  0x10   : > { %368 = vst [vmem:[#allocation3 + $0x100] sm:$0xff] %v1580_v1  ;;  %369 = vst [vmem:[#allocation3 + $0x18] sm:$0xff] %v1580_v1  ;;  %v1722_v17 = vcombine.high %v1716_v14, %v1716_v14 }
  0x11   : > { %370 = vst [vmem:[#allocation3 + $0xd8] sm:$0xff] %v1580_v1  ;;  %371 = vst [vmem:[#allocation3 + $0xe0] sm:$0xff] %v1580_v1  ;;  %v488_v8 = vrot.slane %v405_v3, %v487_v4  ;;  %v418_v9 = vrot.slane %v405_v3, %v417_v5  ;;  %v492_v10 = vrot.slane %v405_v3, %v491_v6 }
  0x12   : > { %372 = vst [vmem:[#allocation3 + $0x60] sm:$0xff] %v1580_v1  ;;  %373 = vst [vmem:[#allocation3 + $0xe8] sm:$0xff] %v1580_v1  ;;  %v422_v11 = vrot.slane %v405_v3, %v421_v7 }
  0x13   : > { %374 = vst [vmem:[#allocation3 + $0x118] sm:$0xff] %v1580_v1  ;;  %375 = vst [vmem:[#allocation3 + $0xd0] sm:$0xff] %v1580_v1  ;;  %v498_v12 = vrot.slane %v488_v8, %v487_v4  ;;  %v428_v13 = vrot.slane %v418_v9, %v417_v5  ;;  %v502_v15 = vrot.slane %v492_v10, %v487_v4  ;;  %v533_v37 = vld [vmem:[#allocation2 + $0x30] sm:$0xf] }
  0x14   : > { %376 = vst [vmem:[#allocation3 + $0x28] sm:$0xff] %v1580_v1  ;;  %377 = vst [vmem:[#allocation3 + $0xa8] sm:$0xff] %v1580_v1  ;;  %v432_v16 = vrot.slane %v422_v11, %v417_v5  ;;  %v628_v19 = vld [vmem:[#allocation2 + $0x10] sm:$0xf] }
  0x15   : > { %378 = vst [vmem:[#allocation3 + $0x50] sm:$0xff] %v1580_v1  ;;  %379 = vst [vmem:[#allocation3] sm:$0xff] %v1580_v1  ;;  %571 = vrot.lane.b32.xlu1 %v498_v12, %s1581_s21  ;;  %600 = vrot.lane.b32.xlu0 %v428_v13, %s1582_s22  ;;  %v570_v26 = vld [vmem:[#allocation2 + $0x10] sm:$0xf] }
  0x16   : > { %380 = vst [vmem:[#allocation3 + $0x108] sm:$0xff] %v1580_v1  ;;  %381 = vst [vmem:[#allocation3 + $0xf0] sm:$0xff] %v1580_v1  ;;  %v599_v27 = vld [vmem:[#allocation2 + $0x10] sm:$0xf] }
  0x17   : > { %382 = vst [vmem:[#allocation3 + $0xb0] sm:$0xff] %v1580_v1  ;;  %383 = vst [vmem:[#allocation3 + $0x78] sm:$0xff] %v1580_v1  ;;  %v482_v51 = vld [vmem:[#allocation2 + $0x30] sm:$0xf] }
  0x18   : > { %384 = vst [vmem:[#allocation3 + $0x88] sm:$0xff] %v1580_v1  ;;  %385 = vst [vmem:[#allocation3 + $0x70] sm:$0xff] %v1580_v1  ;;  %v463_v5 = vld [vmem:[#allocation2 + $0x30] sm:$0xf] }
  0x19   : > { %386 = vst [vmem:[#allocation3 + $0xc0] sm:$0xff] %v1580_v1  ;;  %387 = vst [vmem:[#allocation3 + $0x68] sm:$0xff] %v1580_v1  ;;  %573 = vrot.lane.b32.xlu1 %v502_v15, %s1581_s21  ;;  %602 = vrot.lane.b32.xlu0 %v432_v16, %s1582_s22  ;;  %v411_v6 = vld [vmem:[#allocation2 + $0x30] sm:$0xf] }
  0x1a   : > { %388 = vst [vmem:[#allocation3 + $0xa0] sm:$0xff] %v1580_v1  ;;  %389 = vst [vmem:[#allocation3 + $0xf8] sm:$0xff] %v1580_v1 }
  0x1b   : > { %390 = vst [vmem:[#allocation3 + $0xb8] sm:$0xff] %v1580_v1  ;;  %391 = vst [vmem:[#allocation3 + $0x80] sm:$0xff] %v1580_v1 }
  0x1c   : > { %392 = vst [vmem:[#allocation3 + $0x48] sm:$0xff] %v1580_v1  ;;  %393 = vst [vmem:[#allocation3 + $0x110] sm:$0xff] %v1580_v1 }
  0x1d   : > { %394 = vst [vmem:[#allocation3 + $0x30] sm:$0xff] %v1580_v1  ;;  %395 = vst [vmem:[#allocation3 + $0xc8] sm:$0xff] %v1580_v1  ;;  %538 = vrot.lane.b32.xlu1 %v432_v16, %s1583_s23  ;;  %536 = vrot.lane.b32.xlu0 %v428_v13, %s1583_s23 }
  0x1e   : > { %396 = vst [vmem:[#allocation3 + $0x38] sm:$0xff] %v1580_v1  ;;  %397 = vst [vmem:[#allocation3 + $0x58] sm:$0xff] %v1580_v1 }
  0x1f   : > { %398 = vst [vmem:[#allocation3 + $0x10] sm:$0xff] %v1580_v1  ;;  %399 = vst [vmem:[#allocation3 + $0x20] sm:$0xff] %v1580_v1 }
  0x20   : > { %400 = vst [vmem:[#allocation3 + $0x8] sm:$0xff] %v1580_v1  ;;  %401 = vst [vmem:[#allocation3 + $0x90] sm:$0xff] %v1580_v1 }
  0x21   : > { %402 = vst [vmem:[#allocation3 + $0x98] sm:$0xff] %v1580_v1  ;;  %403 = vst [vmem:[#allocation3 + $0x40] sm:$0xff] %v1580_v1  ;;  %507 = vrot.lane.b32.xlu1 %v502_v15, %s1584_s24  ;;  %505 = vrot.lane.b32.xlu0 %v498_v12, %s1584_s24 }
  0x22   : > { %409 = vst [vmem:[#allocation2] sm:$0xf] %v1716_v14  ;;  %410 = vst [vmem:[#allocation2 + $0x18] sm:$0xf] %v1722_v17 }
  0x25   : > { %437 = vrot.lane.b32.xlu1 %v432_v16, %s1585_s25  ;;  %435 = vrot.lane.b32.xlu0 %v428_v13, %s1585_s25 }
  0x29   : > { %650 = vrot.lane.b32.xlu1 %v502_v15, %s1586_s26  ;;  %648 = vrot.lane.b32.xlu0 %v498_v12, %s1586_s26  ;;  %v627_v18 = vld [vmem:[#allocation2 + $0x18] sm:$0xf]  ;;  %v626_v20 = vld [vmem:[#allocation2] sm:$0xf] }
  0x2a   : > { %v597_v22 = vld [vmem:[#allocation2] sm:$0xf]  ;;  %v598_v34 = vld [vmem:[#allocation2 + $0x18] sm:$0xf] }
  0x2b   : > { %v568_v33 = vld [vmem:[#allocation2] sm:$0xf]  ;;  %v535_v38 = vld [vmem:[#allocation2 + $0x18] sm:$0xf] }
  0x2c   : > { %v565_v43 = vld [vmem:[#allocation2 + $0x18] sm:$0xf]  ;;  %v564_v47 = vld [vmem:[#allocation2] sm:$0xf] }
  0x2d   : > { %634 = vrot.lane.b32.xlu0 %v627_v18, %s1587_s27  ;;  %636 = vrot.lane.b32.xlu1 %v628_v19, %s1587_s27  ;;  %v484_v46 = vld [vmem:[#allocation2 + $0x18] sm:$0xf]  ;;  %567 = vst [vmem:[#allocation3 + $0x70] sm:$0xf] %v565_v43  ;;  %566 = vst [vmem:[#allocation3 + $0x88] sm:$0xf] %v564_v47 }
  0x2e   : > { %v569_v49 = vld [vmem:[#allocation2 + $0x18] sm:$0xf]  ;;  %v534_v56 = vld [vmem:[#allocation2] sm:$0xf] }
  0x2f   : > { %v464_v61 = vld [vmem:[#allocation2] sm:$0xf]  ;;  %v465_v62 = vld [vmem:[#allocation2 + $0x18] sm:$0xf] }
  0x30   : > { %v483_v4 = vld [vmem:[#allocation2] sm:$0xf]  ;;  %v413_v7 = vld [vmem:[#allocation2 + $0x18] sm:$0xf] }
  0x31   : > { %632 = vrot.lane.b32.xlu0 %v626_v20, %s1587_s27  ;;  %v646_v15 = vld [vmem:[#allocation2 + $0x18] sm:$0xf]  ;;  %v412_v19 = vld [vmem:[#allocation2] sm:$0xf] }
  0x87   : > { %v1739_v23 = vpop.permute.xlu1 %571  ;;  %v1741_v24 = vpop.permute.xlu0 %600 }
  0x88   : > { %v608_v25 = vmul.f32 %v1741_v24, %v597_v22  ;;  %v579_v39 = vmul.f32 %v1739_v23, %v568_v33 }
  0x8a   : > { %614 = vrot.lane.b32.xlu1 %v608_v25, %s1584_s24  ;;  %v647_v25 = vld [vmem:[#allocation2 + $0x10] sm:$0xf] }
  0x8b   : > { %v1745_v28 = vpop.permute.xlu1 %573  ;;  %v1747_v29 = vpop.permute.xlu0 %602 }
  0x8c   : > { %v581_v30 = vmul.f32 %v1745_v28, %v570_v26  ;;  %v610_v31 = vmul.f32 %v1747_v29, %v599_v27  ;;  %v1754_v32 = vsel %vm526_vm0, %v1741_v24, %v1747_v29  ;;  %v1775_v48 = vsel %vm557_vm1, %v1739_v23, %v1745_v28  ;;  %v645_v26 = vld [vmem:[#allocation2] sm:$0xf] }
  0x8d   : > { %v609_v40 = vmul.f32 %v1754_v32, %v598_v34  ;;  %v580_v54 = vmul.f32 %v1775_v48, %v569_v49  ;;  %v1831_v27 = vld [vmem:[%s2124_s2] sm:$0xff] }
  0x8e   : > { %589 = vrot.lane.b32.xlu1 %v581_v30, %s1583_s23  ;;  %618 = vrot.lane.b32.xlu0 %v610_v31, %s1584_s24  ;;  %v718_v30 = vcombine.high %v1831_v27, %v1831_v27  ;;  %v675_v34 = vld [vmem:[%s2125_s3] sm:$0xf] }
  0x8f   : > { %v1758_v35 = vpop.permute.xlu1 %538  ;;  %v1760_v36 = vpop.permute.xlu0 %536 }
  0x90   : > { %v545_v41 = vmul.f32 %v1760_v36, %v533_v37  ;;  %v547_v42 = vmul.f32 %v1758_v35, %v535_v38  ;;  %v1788_v55 = vsel %vm540_vm2, %v1760_v36, %v1758_v35  ;;  %1540 = vmatprep.mubr.msk.f32.mxu0 %vm475_vm7, %v718_v30  ;;  %v931_v37 = vld [vmem:[#allocation2 + $0x10] sm:$0xf0] }
  0x91   : > { %v546_v60 = vmul.f32 %v1788_v55, %v534_v56  ;;  %v910_v38 = vld [vmem:[#allocation2 + $0x10] sm:$0xf0] }
  0x92   : > { %585 = vrot.lane.b32.xlu0 %v579_v39, %s1583_s23  ;;  %616 = vrot.lane.b32.xlu1 %v609_v40, %s1584_s24  ;;  %v889_v39 = vld [vmem:[#allocation2 + $0x10] sm:$0xf0]  ;;  %v913_v40 = vmul.f32 %v910_v38, %v1747_v29 }
  0x93   : > { %v1768_v44 = vpop.permute.xlu1 %507  ;;  %v1770_v45 = vpop.permute.xlu0 %505 }
  0x94   : > { %v516_v50 = vmul.f32 %v1768_v44, %v484_v46  ;;  %v514_v57 = vmul.f32 %v1770_v45, %v482_v51  ;;  %v1804_v3 = vsel %vm509_vm4, %v1770_v45, %v1768_v44 }
  0x95   : > { %v515_v9 = vmul.f32 %v1804_v3, %v483_v4 }
  0x96   : > { %551 = vrot.lane.b32.xlu1 %v545_v41, %s1581_s21  ;;  %555 = vrot.lane.b32.xlu0 %v547_v42, %s1581_s21  ;;  %v892_v41 = vmul.f32 %v889_v39, %v1745_v28 }
  0x97   : > { %v1780_v52 = vpop.permute.xlu1 %437  ;;  %v1782_v53 = vpop.permute.xlu0 %435 }
  0x98   : > { %v444_v11 = vmul.f32 %v1782_v53, %v411_v6  ;;  %v446_v12 = vmul.f32 %v1780_v52, %v413_v7  ;;  %v1822_v18 = vsel %vm439_vm6, %v1782_v53, %v1780_v52 }
  0x99   : > { %v445_v21 = vmul.f32 %v1822_v18, %v412_v19  ;;  %v692_v19 = vld [vmem:[#allocation3 + $0x88] sm:$0xff] }
  0x9a   : > { %587 = vrot.lane.b32.xlu0 %v580_v54, %s1583_s23  ;;  %524 = vrot.lane.b32.xlu1 %v516_v50, %s1582_s22 }
  0x9b   : > { %v1793_v58 = vpop.permute.xlu1 %650  ;;  %v1795_v59 = vpop.permute.xlu0 %648 }
  0x9c   : > { %v1817_v13 = vsel %vm456_vm5, %v1795_v59, %v1793_v58  ;;  %v658_v31 = vmul.f32 %v1793_v58, %v647_v25  ;;  %v656_v33 = vmul.f32 %v1795_v59, %v645_v26 }
  0x9d   : > { %v657_v20 = vmul.f32 %v1817_v13, %v646_v15 }
  0x9e   : > { %520 = vrot.lane.b32.xlu0 %v514_v57, %s1582_s22  ;;  %553 = vrot.lane.b32.xlu1 %v546_v60, %s1581_s21 }
  0x9f   : > { %v635_v63 = vpop.permute.xlu0 %634  ;;  %v637_v0 = vpop.permute.xlu1 %636 }
  0xa0   : > { %v640_v2 = vsel %vm638_vm3, %v635_v63, %v637_v0 }
  0xa1   : > { %644 = vst [vmem:[#allocation3 + $0x58] sm:$0xf] %v640_v2 }
  0xa2   : > { %471 = vrot.lane.b32.xlu1 %v464_v61, %s1589_s28  ;;  %473 = vrot.lane.b32.xlu0 %v465_v62, %s1589_s28 }
  0xa3   : > { %v633_v8 = vpop.permute.xlu0 %632 }
  0xa4   : > { %v639_v10 = vsel %vm638_vm3, %v633_v8, %v635_v63 }
  0xa5   : > { %643 = vst [vmem:[#allocation3 + $0x38] sm:$0xf] %v639_v10 }
  0xa6   : > { %469 = vrot.lane.b32.xlu1 %v463_v5, %s1589_s28  ;;  %522 = vrot.lane.b32.xlu0 %v515_v9, %s1582_s22 }
  0xa8   : > { %v705_v16 = vld [vmem:[#allocation3 + $0x58] sm:$0xff] }
  0xa9   : > { %723 = vmatprep.subr.mxu0 %v705_v16 }
  0xaa   : > { %450 = vrot.lane.b32.xlu0 %v444_v11, %s1586_s26  ;;  %454 = vrot.lane.b32.xlu1 %v446_v12, %s1586_s26  ;;  %v693_v12 = vld [vmem:[#allocation3 + $0x70] sm:$0xff] }
  0xac   : > { %v704_v22 = vld [vmem:[#allocation3 + $0x38] sm:$0xff] }
  0xad   : > { %724 = vmatpush1.msra.mxu0 %v704_v22 }
  0xae   : > { %452 = vrot.lane.b32.xlu0 %v445_v21, %s1586_s26  ;;  %664 = vrot.lane.b32.xlu1 %v657_v20, %s1585_s25 }
  0xaf   : > { %725 = vmatprep.subr.mxu0 %v1580_v1 }
  0xb0   : > { %726 = vmatpush1.msra.mxu0 %v1580_v1 }
  0xb2   : > { %666 = vrot.lane.b32.xlu0 %v658_v31, %s1585_s25  ;;  %662 = vrot.lane.b32.xlu1 %v656_v33, %s1585_s25 }
  0xb6   : > { %714 = vperm.xlu0 %1566, %v675_v34   ;;  %939 = vrot.lane.b32.xlu1 %v931_v37, %s1587_s27 }
  0xba   : > { %921 = vrot.lane.b32.xlu0 %v913_v40, %s1584_s24  ;;  %900 = vrot.lane.b32.xlu1 %v892_v41, %s1583_s23 }
  0xfc   : > { %v615_v42 = vpop.permute.xlu1 %614 }
 0x100   : > { %v590_v43 = vpop.permute.xlu1 %589  ;;  %v619_v46 = vpop.permute.xlu0 %618 }
 0x104   : > { %v586_v47 = vpop.permute.xlu0 %585  ;;  %v617_v49 = vpop.permute.xlu1 %616 }
 0x105   : > { %v620_v50 = vsel %vm509_vm4, %v615_v42, %v617_v49  ;;  %v621_v51 = vsel %vm509_vm4, %v617_v49, %v619_v46 }
 0x106   : > { %624 = vst [vmem:[#allocation3 + $0x48] sm:$0xf] %v620_v50  ;;  %625 = vst [vmem:[#allocation3 + $0x110] sm:$0xf] %v621_v51 }
 0x108   : > { %v552_v54 = vpop.permute.xlu1 %551  ;;  %v556_v56 = vpop.permute.xlu0 %555 }
 0x10c   : > { %v588_v57 = vpop.permute.xlu0 %587  ;;  %v525_v60 = vpop.permute.xlu1 %524 }
 0x10d   : > { %v591_v61 = vsel %vm540_vm2, %v586_v47, %v588_v57  ;;  %v592_v62 = vsel %vm540_vm2, %v588_v57, %v590_v43  ;;  %v701_v63 = vld [vmem:[#allocation3 + $0x110] sm:$0xff]  ;;  %v700_v0 = vld [vmem:[#allocation3 + $0x48] sm:$0xff] }
 0x10e   : > { %595 = vst [vmem:[#allocation3 + $0xa0] sm:$0xf] %v591_v61  ;;  %596 = vst [vmem:[#allocation3 + $0xf8] sm:$0xf] %v592_v62  ;;  %727 = vmatprep.subr.mxu0 %v701_v63 }
 0x10f   : > { %728 = vmatpush1.msra.mxu0 %v700_v0 }
 0x110   : > { %v521_v2 = vpop.permute.xlu0 %520  ;;  %v554_v4 = vpop.permute.xlu1 %553  ;;  %729 = vmatprep.subr.mxu0 %v1580_v1 }
 0x111   : > { %v558_v5 = vsel %vm557_vm1, %v552_v54, %v554_v4  ;;  %v559_v6 = vsel %vm557_vm1, %v554_v4, %v556_v56  ;;  %730 = vmatpush1.msra.mxu0 %v1580_v1 }
 0x112   : > { %562 = vst [vmem:[#allocation3 + $0x108] sm:$0xf] %v558_v5  ;;  %563 = vst [vmem:[#allocation3 + $0xf0] sm:$0xf] %v559_v6 }
 0x114   : > { %v472_v7 = vpop.permute.xlu1 %471  ;;  %v474_v8 = vpop.permute.xlu0 %473 }
 0x115   : > { %v477_v9 = vsel %vm475_vm7, %v472_v7, %v474_v8  ;;  %v697_v10 = vld [vmem:[#allocation3 + $0xf8] sm:$0xff]  ;;  %v696_v11 = vld [vmem:[#allocation3 + $0xa0] sm:$0xff] }
 0x116   : > { %481 = vst [vmem:[#allocation3 + $0xe8] sm:$0xf] %v477_v9  ;;  %731 = vmatprep.subr.mxu0 %v697_v10 }
 0x117   : > { %732 = vmatpush1.msra.mxu0 %v696_v11 }
 0x118   : > { %733 = vmatprep.subr.mxu0 %v1580_v1  ;;  %v470_v15 = vpop.permute.xlu1 %469  ;;  %v523_v16 = vpop.permute.xlu0 %522 }
 0x119   : > { %v476_v20 = vsel %vm475_vm7, %v470_v15, %v472_v7  ;;  %v527_v21 = vsel %vm526_vm0, %v521_v2, %v523_v16  ;;  %v528_v22 = vsel %vm526_vm0, %v523_v16, %v525_v60  ;;  %734 = vmatpush1.msra.mxu0 %v1580_v1  ;;  %v689_v30 = vld [vmem:[#allocation3 + $0xf0] sm:$0xff]  ;;  %v688_v31 = vld [vmem:[#allocation3 + $0x108] sm:$0xff] }
 0x11a   : > { %480 = vst [vmem:[#allocation3 + $0x60] sm:$0xf] %v476_v20  ;;  %531 = vst [vmem:[#allocation3 + $0x28] sm:$0xf] %v527_v21  ;;  %735 = vmatprep.subr.mxu0 %v693_v12 }
 0x11b   : > { %532 = vst [vmem:[#allocation3 + $0xa8] sm:$0xf] %v528_v22  ;;  %736 = vmatpush1.msra.mxu0 %v692_v19 }
 0x11c   : > { %737 = vmatprep.subr.mxu0 %v1580_v1  ;;  %v451_v25 = vpop.permute.xlu0 %450  ;;  %v455_v26 = vpop.permute.xlu1 %454 }
 0x11d   : > { %738 = vmatpush1.msra.mxu0 %v1580_v1  ;;  %v681_v47 = vld [vmem:[#allocation3 + $0xe8] sm:$0xff] }
 0x11e   : > { %739 = vmatprep.subr.mxu0 %v689_v30 }
 0x11f   : > { %740 = vmatpush1.msra.mxu0 %v688_v31  ;;  %v862_v31 = vld [vmem:[#allocation2 + $0x30] sm:$0xf0] }
 0x120   : > { %741 = vmatprep.subr.mxu0 %v1580_v1  ;;  %v453_v33 = vpop.permute.xlu0 %452  ;;  %v665_v34 = vpop.permute.xlu1 %664 }
 0x121   : > { %v457_v37 = vsel %vm456_vm5, %v451_v25, %v453_v33  ;;  %v458_v38 = vsel %vm456_vm5, %v453_v33, %v455_v26  ;;  %742 = vmatpush1.msra.mxu0 %v1580_v1  ;;  %v684_v40 = vld [vmem:[#allocation3 + $0x28] sm:$0xff]  ;;  %v680_v49 = vld [vmem:[#allocation3 + $0x60] sm:$0xff]  ;;  %v841_v26 = vld [vmem:[#allocation2 + $0x30] sm:$0xf0] }
 0x122   : > { %v685_v39 = vld [vmem:[#allocation3 + $0xa8] sm:$0xff]  ;;  %461 = vst [vmem:[#allocation3 + $0x100] sm:$0xf] %v457_v37  ;;  %462 = vst [vmem:[#allocation3 + $0x18] sm:$0xf] %v458_v38  ;;  %v844_v33 = vmul.f32 %v841_v26, %v1770_v45  ;;  %v865_v37 = vmul.f32 %v862_v31, %v1760_v36 }
 0x123   : > { %743 = vmatprep.subr.mxu0 %v685_v39 }
 0x124   : > { %744 = vmatpush1.msra.mxu0 %v684_v40  ;;  %v667_v41 = vpop.permute.xlu0 %666  ;;  %v663_v42 = vpop.permute.xlu1 %662 }
 0x125   : > { %745 = vmatprep.subr.mxu0 %v1580_v1  ;;  %v669_v43 = vsel %vm439_vm6, %v665_v34, %v667_v41  ;;  %v668_v46 = vsel %vm439_vm6, %v663_v42, %v665_v34 }
 0x126   : > { %746 = vmatpush1.msra.mxu0 %v1580_v1  ;;  %673 = vst [vmem:[#allocation3 + $0x90] sm:$0xf] %v669_v43  ;;  %672 = vst [vmem:[#allocation3 + $0x8] sm:$0xf] %v668_v46 }
 0x127   : > { %747 = vmatprep.subr.mxu0 %v681_v47  ;;  %v823_v47 = vld [vmem:[#allocation2 + $0x30] sm:$0xf0] }
 0x128   : > { %748 = vmatpush1.msra.mxu0 %v680_v49  ;;  %v802_v49 = vld [vmem:[#allocation2 + $0x30] sm:$0xf0] }
 0x129   : > { %749 = vmatprep.subr.mxu0 %v1580_v1  ;;  %v677_v50 = vld [vmem:[#allocation3 + $0x18] sm:$0xff]  ;;  %v676_v51 = vld [vmem:[#allocation3 + $0x100] sm:$0xff] }
 0x12a   : > { %750 = vmatpush1.msra.mxu0 %v1580_v1 }
 0x12b   : > { %751 = vmatprep.subr.mxu0 %v677_v50 }
 0x12c   : > { %752 = vmatpush1.msra.mxu0 %v676_v51  ;;  %v805_v51 = vmul.f32 %v802_v49, %v1782_v53 }
 0x12d   : > { %781 = vmatprep.subr.mxu0 %v1580_v1  ;;  %v709_v54 = vld [vmem:[#allocation3 + $0x90] sm:$0xff]  ;;  %v708_v56 = vld [vmem:[#allocation3 + $0x8] sm:$0xff] }
 0x12e   : > { %782 = vmatpush2.msra.mxu0 %v1580_v1 }
 0x12f   : > { %783 = vmatprep.subr.mxu0 %v709_v54  ;;  %v949_v54 = vld [vmem:[#allocation2 + $0x10] sm:$0xf0] }
 0x130   : > { %784 = vmatpush2.msra.mxu0 %v708_v56 }
 0x131   : > { %786 = vmatmul.mubr.f32.vlgmr.msra.gmra.mxu0 %v1831_v27  ;;  %v715_v57 = vpop.permute.xlu0 %714 }
 0x1f1   : > { %v787_v60 = vpop.f32.mrf.mxu0 }
 0x1f2   : > { %v788_v61 = vadd.f32 %v787_v60, %v715_v57  ;;  %v952_v60 = vmul.f32 %v949_v54, %v1793_v58 }
 0x1f3   : > { %v789_v62 = vpop.f32.mrf.mxu0 }
 0x1f4   : > { %v792_v63 = vmax.f32 %v788_v61, 0.0  ;;  %v790_v0 = vadd.f32 %v789_v62, %v715_v57  ;;  %v969_v62 = vld [vmem:[%s2127_s5] sm:$0xf] }
 0x1f6   : > { %v796_v2 = vrot.slane %v792_v63, 4  ;;  %v793_v4 = vmax.f32 %v790_v0, 0.0  ;;  %v1922_v0 = vld [vmem:[%s2126_s4] sm:$0xff] }
 0x1f8   : > { %800 = vst [vmem:[#allocation2] sm:$0xf0] %v796_v2  ;;  %v797_v5 = vrot.slane %v793_v4, 4  ;;  %v1012_v2 = vcombine.high %v1922_v0, %v1922_v0 }
 0x1fa   : > { %801 = vst [vmem:[#allocation2 + $0x18] sm:$0xf0] %v797_v5  ;;  %v1219_v5 = vld [vmem:[#allocation2 + $0x38] sm:$0xf]  ;;  %1541 = vmatprep.mubr.msk.f32.mxu1 %vm475_vm7, %v1012_v2 }
 0x1ff   : > { %v883_v6 = vld [vmem:[#allocation2] sm:$0xf0] }
 0x200   : > { %v929_v7 = vld [vmem:[#allocation2] sm:$0xf0]  ;;  %885 = vst [vmem:[#allocation3 + $0x88] sm:$0xf0] %v883_v6  ;;  %v1198_v6 = vld [vmem:[#allocation2 + $0x38] sm:$0xf] }
 0x201   : > { %v887_v8 = vld [vmem:[#allocation2] sm:$0xf0]  ;;  %935 = vrot.lane.b32.xlu0 %v929_v7, %s1587_s27  ;;  %v884_v9 = vld [vmem:[#allocation2 + $0x18] sm:$0xf0]  ;;  %v1177_v7 = vld [vmem:[#allocation2 + $0x38] sm:$0xf] }
 0x202   : > { %v930_v10 = vld [vmem:[#allocation2 + $0x18] sm:$0xf0]  ;;  %v908_v27 = vld [vmem:[#allocation2] sm:$0xf0]  ;;  %886 = vst [vmem:[#allocation3 + $0x70] sm:$0xf0] %v884_v9  ;;  %v890_v11 = vmul.f32 %v887_v8, %v1739_v23  ;;  %v1201_v8 = vmul.f32 %v1198_v6, %v1747_v29  ;;  %v1180_v9 = vmul.f32 %v1177_v7, %v1745_v28 }
 0x203   : > { %937 = vrot.lane.b32.xlu1 %v930_v10, %s1587_s27  ;;  %v842_v12 = vld [vmem:[#allocation2] sm:$0xf0]  ;;  %v911_v15 = vmul.f32 %v908_v27, %v1741_v24  ;;  %v909_v16 = vld [vmem:[#allocation2 + $0x18] sm:$0xf0]  ;;  %v940_v10 = vpop.permute.xlu1 %939  ;;  %v922_v27 = vpop.permute.xlu0 %921 }
 0x204   : > { %v845_v19 = vmul.f32 %v842_v12, %v1804_v3  ;;  %v888_v20 = vld [vmem:[#allocation2 + $0x18] sm:$0xf0]  ;;  %v912_v21 = vmul.f32 %v909_v16, %v1754_v32  ;;  %v863_v22 = vld [vmem:[#allocation2] sm:$0xf0] }
 0x205   : > { %896 = vrot.lane.b32.xlu0 %v890_v11, %s1583_s23  ;;  %v891_v25 = vmul.f32 %v888_v20, %v1775_v48  ;;  %v866_v30 = vmul.f32 %v863_v22, %v1788_v55  ;;  %v864_v34 = vld [vmem:[#allocation2 + $0x18] sm:$0xf0]  ;;  %v824_v39 = vld [vmem:[#allocation2] sm:$0xf0] }
 0x206   : > { %v867_v38 = vmul.f32 %v864_v34, %v1758_v35  ;;  %v843_v40 = vld [vmem:[#allocation2 + $0x18] sm:$0xf0]  ;;  %v803_v42 = vld [vmem:[#allocation2] sm:$0xf0] }
 0x207   : > { %917 = vrot.lane.b32.xlu1 %v911_v15, %s1584_s24  ;;  %v825_v41 = vld [vmem:[#allocation2 + $0x18] sm:$0xf0]  ;;  %v846_v43 = vmul.f32 %v843_v40, %v1768_v44  ;;  %v806_v46 = vmul.f32 %v803_v42, %v1822_v18  ;;  %v947_v63 = vld [vmem:[#allocation2] sm:$0xf0]  ;;  %v901_v11 = vpop.permute.xlu1 %900 }
 0x208   : > { %v804_v50 = vld [vmem:[#allocation2 + $0x18] sm:$0xf0]  ;;  %v950_v4 = vmul.f32 %v947_v63, %v1795_v59  ;;  %v1972_v63 = vld [vmem:[#allocation3 + $0x88] sm:$0xff] }
 0x209   : > { %852 = vrot.lane.b32.xlu0 %v845_v19, %s1582_s22  ;;  %v807_v56 = vmul.f32 %v804_v50, %v1780_v52  ;;  %v948_v57 = vld [vmem:[#allocation2 + $0x18] sm:$0xf0] }
 0x20a   : > { %v951_v61 = vmul.f32 %v948_v57, %v1817_v13 }
 0x20b   : > { %919 = vrot.lane.b32.xlu1 %v912_v21, %s1584_s24 }
 0x20d   : > { %898 = vrot.lane.b32.xlu0 %v891_v25, %s1583_s23 }
 0x20f   : > { %873 = vrot.lane.b32.xlu1 %v866_v30, %s1581_s21 }
 0x211   : > { %850 = vrot.lane.b32.xlu0 %v844_v33, %s1582_s22 }
 0x213   : > { %871 = vrot.lane.b32.xlu1 %v865_v37, %s1581_s21 }
 0x215   : > { %875 = vrot.lane.b32.xlu0 %v867_v38, %s1581_s21 }
 0x217   : > { %831 = vrot.lane.b32.xlu1 %v824_v39, %s1589_s28 }
 0x219   : > { %833 = vrot.lane.b32.xlu0 %v825_v41, %s1589_s28 }
 0x21b   : > { %854 = vrot.lane.b32.xlu1 %v846_v43, %s1582_s22 }
 0x21d   : > { %813 = vrot.lane.b32.xlu0 %v806_v46, %s1586_s26 }
 0x21f   : > { %829 = vrot.lane.b32.xlu1 %v823_v47, %s1589_s28 }
 0x221   : > { %811 = vrot.lane.b32.xlu0 %v805_v51, %s1586_s26 }
 0x223   : > { %815 = vrot.lane.b32.xlu1 %v807_v56, %s1586_s26 }
 0x225   : > { %960 = vrot.lane.b32.xlu0 %v952_v60, %s1585_s25 }
 0x227   : > { %958 = vrot.lane.b32.xlu1 %v951_v61, %s1585_s25  ;;  %v1969_v61 = vld [vmem:[#allocation3 + $0x70] sm:$0xff] }
 0x229   : > { %1008 = vperm.xlu0 %1566, %v969_v62  }
 0x22b   : > { %956 = vrot.lane.b32.xlu1 %v950_v4, %s1585_s25 }
 0x22d   : > { %1227 = vrot.lane.b32.xlu0 %v1219_v5, %s1587_s27 }
 0x22f   : > { %1209 = vrot.lane.b32.xlu1 %v1201_v8, %s1584_s24 }
 0x231   : > { %1188 = vrot.lane.b32.xlu0 %v1180_v9, %s1583_s23 }
 0x273   : > { %v936_v12 = vpop.permute.xlu0 %935 }
 0x275   : > { %v938_v15 = vpop.permute.xlu1 %937 }
 0x276   : > { %v941_v16 = vsel %vm638_vm3, %v936_v12, %v938_v15  ;;  %v942_v19 = vsel %vm638_vm3, %v938_v15, %v940_v10 }
 0x277   : > { %945 = vst [vmem:[#allocation3 + $0x38] sm:$0xf0] %v941_v16  ;;  %946 = vst [vmem:[#allocation3 + $0x58] sm:$0xf0] %v942_v19  ;;  %v897_v20 = vpop.permute.xlu0 %896 }
 0x279   : > { %v918_v21 = vpop.permute.xlu1 %917 }
 0x27b   : > { %v853_v29 = vpop.permute.xlu0 %852 }
 0x27d   : > { %v920_v22 = vpop.permute.xlu1 %919 }
 0x27e   : > { %v923_v25 = vsel %vm509_vm4, %v918_v21, %v920_v22  ;;  %v924_v28 = vsel %vm509_vm4, %v920_v22, %v922_v27  ;;  %v1938_v26 = vld [vmem:[#allocation3 + $0x58] sm:$0xff] }
 0x27f   : > { %v1940_v30 = vld [vmem:[#allocation3 + $0x38] sm:$0xff]  ;;  %927 = vst [vmem:[#allocation3 + $0x48] sm:$0xf0] %v923_v25  ;;  %928 = vst [vmem:[#allocation3 + $0x110] sm:$0xf0] %v924_v28  ;;  %v899_v31 = vpop.permute.xlu0 %898  ;;  %1017 = vmatprep.subr.mxu1 %v1938_v26 }
 0x280   : > { %v902_v33 = vsel %vm540_vm2, %v897_v20, %v899_v31  ;;  %v903_v34 = vsel %vm540_vm2, %v899_v31, %v901_v11  ;;  %1018 = vmatpush1.msra.mxu1 %v1940_v30 }
 0x281   : > { %906 = vst [vmem:[#allocation3 + $0xa0] sm:$0xf0] %v902_v33  ;;  %907 = vst [vmem:[#allocation3 + $0xf8] sm:$0xf0] %v903_v34  ;;  %v874_v37 = vpop.permute.xlu1 %873  ;;  %1019 = vmatprep.subr.mxu1 %v1580_v1 }
 0x282   : > { %1020 = vmatpush1.msra.mxu1 %v1580_v1 }
 0x283   : > { %v851_v38 = vpop.permute.xlu0 %850 }
 0x284   : > { %v856_v39 = vsel %vm526_vm0, %v851_v38, %v853_v29 }
 0x285   : > { %860 = vst [vmem:[#allocation3 + $0x28] sm:$0xf0] %v856_v39  ;;  %v872_v40 = vpop.permute.xlu1 %871 }
 0x286   : > { %v877_v41 = vsel %vm557_vm1, %v872_v40, %v874_v37  ;;  %v1950_v42 = vld [vmem:[#allocation3 + $0x110] sm:$0xff]  ;;  %v1952_v43 = vld [vmem:[#allocation3 + $0x48] sm:$0xff] }
 0x287   : > { %881 = vst [vmem:[#allocation3 + $0x108] sm:$0xf0] %v877_v41  ;;  %v876_v46 = vpop.permute.xlu0 %875  ;;  %1021 = vmatprep.subr.mxu1 %v1950_v42 }
 0x288   : > { %v878_v47 = vsel %vm557_vm1, %v874_v37, %v876_v46  ;;  %1022 = vmatpush1.msra.mxu1 %v1952_v43  ;;  %v1959_v50 = vld [vmem:[#allocation3 + $0xf8] sm:$0xff]  ;;  %v1962_v54 = vld [vmem:[#allocation3 + $0xa0] sm:$0xff] }
 0x289   : > { %882 = vst [vmem:[#allocation3 + $0xf0] sm:$0xf0] %v878_v47  ;;  %1023 = vmatprep.subr.mxu1 %v1580_v1  ;;  %v832_v49 = vpop.permute.xlu1 %831 }
 0x28a   : > { %1024 = vmatpush1.msra.mxu1 %v1580_v1 }
 0x28b   : > { %v834_v51 = vpop.permute.xlu0 %833  ;;  %1025 = vmatprep.subr.mxu1 %v1959_v50 }
 0x28c   : > { %v836_v56 = vsel %vm475_vm7, %v832_v49, %v834_v51  ;;  %1026 = vmatpush1.msra.mxu1 %v1962_v54  ;;  %v1991_v11 = vld [vmem:[#allocation3 + $0x28] sm:$0xff] }
 0x28d   : > { %840 = vst [vmem:[#allocation3 + $0xe8] sm:$0xf0] %v836_v56  ;;  %1027 = vmatprep.subr.mxu1 %v1580_v1  ;;  %v855_v57 = vpop.permute.xlu1 %854 }
 0x28e   : > { %v857_v60 = vsel %vm526_vm0, %v853_v29, %v855_v57  ;;  %1028 = vmatpush1.msra.mxu1 %v1580_v1  ;;  %v1981_v7 = vld [vmem:[#allocation3 + $0x108] sm:$0xff] }
 0x28f   : > { %861 = vst [vmem:[#allocation3 + $0xa8] sm:$0xf0] %v857_v60  ;;  %v814_v62 = vpop.permute.xlu0 %813  ;;  %1029 = vmatprep.subr.mxu1 %v1969_v61 }
 0x290   : > { %1030 = vmatpush1.msra.mxu1 %v1972_v63  ;;  %v1978_v5 = vld [vmem:[#allocation3 + $0xf0] sm:$0xff] }
 0x291   : > { %1031 = vmatprep.subr.mxu1 %v1580_v1  ;;  %v830_v2 = vpop.permute.xlu1 %829 }
 0x292   : > { %v835_v4 = vsel %vm475_vm7, %v830_v2, %v832_v49  ;;  %1032 = vmatpush1.msra.mxu1 %v1580_v1 }
 0x293   : > { %839 = vst [vmem:[#allocation3 + $0x60] sm:$0xf0] %v835_v4  ;;  %v812_v6 = vpop.permute.xlu0 %811  ;;  %1033 = vmatprep.subr.mxu1 %v1978_v5 }
 0x294   : > { %v817_v8 = vsel %vm456_vm5, %v812_v6, %v814_v62  ;;  %1034 = vmatpush1.msra.mxu1 %v1981_v7  ;;  %v1997_v19 = vld [vmem:[#allocation3 + $0xe8] sm:$0xff] }
 0x295   : > { %821 = vst [vmem:[#allocation3 + $0x100] sm:$0xf0] %v817_v8  ;;  %1035 = vmatprep.subr.mxu1 %v1580_v1  ;;  %v816_v9 = vpop.permute.xlu1 %815  ;;  %v1150_v6 = vld [vmem:[#allocation2 + $0x8] sm:$0xf] }
 0x296   : > { %v818_v10 = vsel %vm456_vm5, %v814_v62, %v816_v9  ;;  %1036 = vmatpush1.msra.mxu1 %v1580_v1  ;;  %v1988_v27 = vld [vmem:[#allocation3 + $0xa8] sm:$0xff] }
 0x297   : > { %822 = vst [vmem:[#allocation3 + $0x18] sm:$0xf0] %v818_v10  ;;  %1037 = vmatprep.subr.mxu1 %v1988_v27  ;;  %v961_v12 = vpop.permute.xlu0 %960 }
 0x298   : > { %1038 = vmatpush1.msra.mxu1 %v1991_v11 }
 0x299   : > { %1039 = vmatprep.subr.mxu1 %v1580_v1  ;;  %v959_v15 = vpop.permute.xlu1 %958 }
 0x29a   : > { %v963_v16 = vsel %vm439_vm6, %v959_v15, %v961_v12  ;;  %1040 = vmatpush1.msra.mxu1 %v1580_v1  ;;  %v1999_v20 = vld [vmem:[#allocation3 + $0x60] sm:$0xff] }
 0x29b   : > { %967 = vst [vmem:[#allocation3 + $0x90] sm:$0xf0] %v963_v16  ;;  %1041 = vmatprep.subr.mxu1 %v1997_v19 }
 0x29c   : > { %1042 = vmatpush1.msra.mxu1 %v1999_v20  ;;  %v2009_v25 = vld [vmem:[#allocation3 + $0x100] sm:$0xff] }
 0x29d   : > { %1043 = vmatprep.subr.mxu1 %v1580_v1  ;;  %v957_v21 = vpop.permute.xlu1 %956 }
 0x29e   : > { %v962_v29 = vsel %vm439_vm6, %v957_v21, %v959_v15  ;;  %1044 = vmatpush1.msra.mxu1 %v1580_v1  ;;  %v2006_v22 = vld [vmem:[#allocation3 + $0x18] sm:$0xff]  ;;  %v1111_v21 = vld [vmem:[#allocation2 + $0x8] sm:$0xf] }
 0x29f   : > { %966 = vst [vmem:[#allocation3 + $0x8] sm:$0xf0] %v962_v29  ;;  %1045 = vmatprep.subr.mxu1 %v2006_v22 }
 0x2a0   : > { %1046 = vmatpush1.msra.mxu1 %v2009_v25 }
 0x2a1   : > { %1075 = vmatprep.subr.mxu1 %v1580_v1 }
 0x2a2   : > { %1076 = vmatpush2.msra.mxu1 %v1580_v1  ;;  %v2014_v28 = vld [vmem:[#allocation3 + $0x90] sm:$0xff] }
 0x2a3   : > { %1077 = vmatprep.subr.mxu1 %v2014_v28 }
 0x2a4   : > { %v1009_v33 = vpop.permute.xlu0 %1008 }
 0x2a6   : > { %v2017_v31 = vld [vmem:[#allocation3 + $0x8] sm:$0xff] }
 0x2a7   : > { %1078 = vmatpush2.msra.mxu1 %v2017_v31 }
 0x2a8   : > { %1080 = vmatmul.mubr.f32.vlgmr.msra.gmra.mxu1 %v1922_v0 }
 0x2a9   : > { %1462 = vmatprep.mubr.f32.mxu1 %v1580_v1 }
 0x368   : > { %v1081_v34 = vpop.f32.mrf.mxu1 }
 0x369   : > { %v1082_v37 = vadd.f32 %v1081_v34, %v1009_v33 }
 0x36a   : > { %v1083_v38 = vpop.f32.mrf.mxu1 }
 0x36b   : > { %v1086_v39 = vmax.f32 %v1082_v37, 0.0  ;;  %v1084_v40 = vadd.f32 %v1083_v38, %v1009_v33  ;;  %v1090_v37 = vld [vmem:[#allocation2 + $0x8] sm:$0xf] }
 0x36d   : > { %1088 = vst [vmem:[#allocation2 + $0x20] sm:$0xf] %v1086_v39  ;;  %v1087_v41 = vmax.f32 %v1084_v40, 0.0  ;;  %v1093_v39 = vmul.f32 %v1090_v37, %v1782_v53  ;;  %v1237_v40 = vld [vmem:[#allocation2 + $0x38] sm:$0xf] }
 0x36f   : > { %1089 = vst [vmem:[#allocation2 + $0x28] sm:$0xf] %v1087_v41  ;;  %v1240_v41 = vmul.f32 %v1237_v40, %v1793_v58  ;;  %v1228_v58 = vpop.permute.xlu0 %1227 }
 0x374   : > { %v1171_v46 = vld [vmem:[#allocation2 + $0x20] sm:$0xf] }
 0x375   : > { %v1217_v47 = vld [vmem:[#allocation2 + $0x20] sm:$0xf]  ;;  %1173 = vst [vmem:[#allocation3 + $0xc0] sm:$0xf] %v1171_v46  ;;  %v1210_v46 = vpop.permute.xlu1 %1209 }
 0x376   : > { %v1196_v49 = vld [vmem:[#allocation2 + $0x20] sm:$0xf]  ;;  %1223 = vrot.lane.b32.xlu1 %v1217_v47, %s1587_s27  ;;  %v1172_v0 = vld [vmem:[#allocation2 + $0x28] sm:$0xf]  ;;  %v1189_v47 = vpop.permute.xlu0 %1188 }
 0x377   : > { %v1199_v51 = vmul.f32 %v1196_v49, %v1741_v24  ;;  %v1197_v56 = vld [vmem:[#allocation2 + $0x28] sm:$0xf]  ;;  %1174 = vst [vmem:[#allocation3 + $0x68] sm:$0xf] %v1172_v0  ;;  %v1175_v57 = vld [vmem:[#allocation2 + $0x20] sm:$0xf] }
 0x378   : > { %v1218_v1 = vld [vmem:[#allocation2 + $0x28] sm:$0xf]  ;;  %v1200_v60 = vmul.f32 %v1197_v56, %v1754_v32  ;;  %v1151_v62 = vld [vmem:[#allocation2 + $0x20] sm:$0xf]  ;;  %v1178_v2 = vmul.f32 %v1175_v57, %v1739_v23  ;;  %v1153_v32 = vmul.f32 %v1150_v6, %v1760_v36 }
 0x379   : > { %1205 = vrot.lane.b32.xlu0 %v1199_v51, %s1584_s24  ;;  %v1130_v4 = vld [vmem:[#allocation2 + $0x20] sm:$0xf]  ;;  %v1154_v24 = vmul.f32 %v1151_v62, %v1788_v55  ;;  %v1176_v9 = vld [vmem:[#allocation2 + $0x28] sm:$0xf] }
 0x37a   : > { %1225 = vrot.lane.b32.xlu1 %v1218_v1, %s1587_s27  ;;  %v1133_v8 = vmul.f32 %v1130_v4, %v1804_v3  ;;  %v1179_v10 = vmul.f32 %v1176_v9, %v1775_v48  ;;  %v1129_v23 = vld [vmem:[#allocation2 + $0x8] sm:$0xf]  ;;  %v1112_v12 = vld [vmem:[#allocation2 + $0x20] sm:$0xf] }
 0x37b   : > { %v1131_v15 = vld [vmem:[#allocation2 + $0x28] sm:$0xf]  ;;  %v1132_v55 = vmul.f32 %v1129_v23, %v1770_v45  ;;  %v1091_v33 = vld [vmem:[#allocation2 + $0x20] sm:$0xf] }
 0x37c   : > { %v1152_v16 = vld [vmem:[#allocation2 + $0x28] sm:$0xf]  ;;  %v1134_v3 = vmul.f32 %v1131_v15, %v1768_v44  ;;  %v1094_v44 = vmul.f32 %v1091_v33, %v1822_v18  ;;  %v1235_v38 = vld [vmem:[#allocation2 + $0x20] sm:$0xf] }
 0x37d   : > { %1207 = vrot.lane.b32.xlu0 %v1200_v60, %s1584_s24  ;;  %v1155_v36 = vmul.f32 %v1152_v16, %v1758_v35  ;;  %v1092_v48 = vld [vmem:[#allocation2 + $0x28] sm:$0xf]  ;;  %v1389_v18 = vld [vmem:[%s2131_s9] sm:$0xf] }
 0x37e   : > { %1184 = vrot.lane.b32.xlu1 %v1178_v2, %s1583_s23  ;;  %v1113_v29 = vld [vmem:[#allocation2 + $0x28] sm:$0xf]  ;;  %v1095_v45 = vmul.f32 %v1092_v48, %v1780_v52  ;;  %v1238_v52 = vmul.f32 %v1235_v38, %v1795_v59  ;;  %v1257_v59 = vld [vmem:[%s2129_s7] sm:$0xf] }
 0x37f   : > { %v1236_v34 = vld [vmem:[#allocation2 + $0x28] sm:$0xf] }
 0x380   : > { %v1239_v35 = vmul.f32 %v1236_v34, %v1817_v13  ;;  %v2064_v13 = vld [vmem:[%s2128_s6] sm:$0xff] }
 0x381   : > { %1161 = vrot.lane.b32.xlu0 %v1154_v24, %s1581_s21  ;;  %v1300_v53 = vcombine.high %v2064_v13, %v2064_v13 }
 0x382   : > { %1140 = vrot.lane.b32.xlu1 %v1133_v8, %s1582_s22 }
 0x383   : > { %1542 = vmatprep.mubr.msk.f32.mxu0 %vm475_vm7, %v1300_v53 }
 0x385   : > { %1159 = vrot.lane.b32.xlu0 %v1153_v32, %s1581_s21 }
 0x386   : > { %1186 = vrot.lane.b32.xlu1 %v1179_v10, %s1583_s23 }
 0x389   : > { %1119 = vrot.lane.b32.xlu0 %v1112_v12, %s1589_s28 }
 0x38a   : > { %1138 = vrot.lane.b32.xlu1 %v1132_v55, %s1582_s22 }
 0x38d   : > { %1142 = vrot.lane.b32.xlu0 %v1134_v3, %s1582_s22 }
 0x38e   : > { %1163 = vrot.lane.b32.xlu1 %v1155_v36, %s1581_s21 }
 0x391   : > { %1117 = vrot.lane.b32.xlu0 %v1111_v21, %s1589_s28 }
 0x392   : > { %1121 = vrot.lane.b32.xlu1 %v1113_v29, %s1589_s28 }
 0x395   : > { %1103 = vrot.lane.b32.xlu0 %v1095_v45, %s1586_s26 }
 0x396   : > { %1101 = vrot.lane.b32.xlu1 %v1094_v44, %s1586_s26  ;;  %v1277_v44 = vld [vmem:[#allocation3 + $0x68] sm:$0xff] }
 0x399   : > { %1246 = vrot.lane.b32.xlu0 %v1239_v35, %s1585_s25  ;;  %v1276_v35 = vld [vmem:[#allocation3 + $0xc0] sm:$0xff] }
 0x39a   : > { %1099 = vrot.lane.b32.xlu1 %v1093_v39, %s1586_s26 }
 0x39d   : > { %1244 = vrot.lane.b32.xlu0 %v1238_v52, %s1585_s25 }
 0x39e   : > { %1248 = vrot.lane.b32.xlu1 %v1240_v41, %s1585_s25 }
 0x3a1   : > { %1392 = vperm.xlu0 %1566, %v1389_v18  }
 0x3a2   : > { %1296 = vperm.xlu1 %1567, %v1257_v59  }
 0x3e8   : > { %v1224_v49 = vpop.permute.xlu1 %1223 }
 0x3eb   : > { %v1206_v51 = vpop.permute.xlu0 %1205 }
 0x3ec   : > { %v1226_v0 = vpop.permute.xlu1 %1225 }
 0x3ed   : > { %v1229_v56 = vsel %vm638_vm3, %v1224_v49, %v1226_v0  ;;  %v1230_v1 = vsel %vm638_vm3, %v1226_v0, %v1228_v58 }
 0x3ee   : > { %1233 = vst [vmem:[#allocation3 + $0x10] sm:$0xf] %v1229_v56  ;;  %1234 = vst [vmem:[#allocation3 + $0x20] sm:$0xf] %v1230_v1 }
 0x3ef   : > { %v1208_v57 = vpop.permute.xlu0 %1207 }
 0x3f0   : > { %v1211_v60 = vsel %vm509_vm4, %v1206_v51, %v1208_v57  ;;  %v1212_v62 = vsel %vm509_vm4, %v1208_v57, %v1210_v46  ;;  %v1185_v2 = vpop.permute.xlu1 %1184 }
 0x3f1   : > { %1215 = vst [vmem:[#allocation3 + $0x30] sm:$0xf] %v1211_v60  ;;  %1216 = vst [vmem:[#allocation3 + $0xc8] sm:$0xf] %v1212_v62 }
 0x3f3   : > { %v1162_v4 = vpop.permute.xlu0 %1161 }
 0x3f4   : > { %v1141_v24 = vpop.permute.xlu1 %1140 }
 0x3f5   : > { %v1289_v6 = vld [vmem:[#allocation3 + $0x20] sm:$0xff]  ;;  %v1288_v8 = vld [vmem:[#allocation3 + $0x10] sm:$0xff] }
 0x3f6   : > { %1303 = vmatprep.subr.mxu0 %v1289_v6 }
 0x3f7   : > { %v1160_v9 = vpop.permute.xlu0 %1159  ;;  %1304 = vmatpush1.msra.mxu0 %v1288_v8 }
 0x3f8   : > { %v1165_v32 = vsel %vm557_vm1, %v1160_v9, %v1162_v4  ;;  %1305 = vmatprep.subr.mxu0 %v1938_v26  ;;  %v1187_v10 = vpop.permute.xlu1 %1186  ;;  %v1285_v15 = vld [vmem:[#allocation3 + $0xc8] sm:$0xff]  ;;  %v1284_v16 = vld [vmem:[#allocation3 + $0x30] sm:$0xff] }
 0x3f9   : > { %1169 = vst [vmem:[#allocation3 + $0xb0] sm:$0xf] %v1165_v32  ;;  %v1190_v23 = vsel %vm540_vm2, %v1185_v2, %v1187_v10  ;;  %v1191_v12 = vsel %vm540_vm2, %v1187_v10, %v1189_v47  ;;  %1306 = vmatpush1.msra.mxu0 %v1940_v30 }
 0x3fa   : > { %1194 = vst [vmem:[#allocation3 + $0xb8] sm:$0xf] %v1190_v23  ;;  %1195 = vst [vmem:[#allocation3 + $0x80] sm:$0xf] %v1191_v12  ;;  %1307 = vmatprep.subr.mxu0 %v1285_v15 }
 0x3fb   : > { %v1120_v55 = vpop.permute.xlu0 %1119  ;;  %1308 = vmatpush1.msra.mxu0 %v1284_v16 }
 0x3fc   : > { %1309 = vmatprep.subr.mxu0 %v1950_v42  ;;  %v1139_v3 = vpop.permute.xlu1 %1138 }
 0x3fd   : > { %v1144_v36 = vsel %vm526_vm0, %v1139_v3, %v1141_v24  ;;  %1310 = vmatpush1.msra.mxu0 %v1952_v43 }
 0x3fe   : > { %1148 = vst [vmem:[#allocation3 + $0x50] sm:$0xf] %v1144_v36 }
 0x3ff   : > { %v1143_v26 = vpop.permute.xlu0 %1142 }
 0x400   : > { %v1145_v21 = vsel %vm526_vm0, %v1141_v24, %v1143_v26  ;;  %v1164_v30 = vpop.permute.xlu1 %1163  ;;  %v1272_v52 = vld [vmem:[#allocation3 + $0xb0] sm:$0xff] }
 0x401   : > { %1149 = vst [vmem:[#allocation3] sm:$0xf] %v1145_v21  ;;  %v1166_v48 = vsel %vm557_vm1, %v1162_v4, %v1164_v30  ;;  %v1281_v29 = vld [vmem:[#allocation3 + $0x80] sm:$0xff]  ;;  %v1280_v33 = vld [vmem:[#allocation3 + $0xb8] sm:$0xff] }
 0x402   : > { %1170 = vst [vmem:[#allocation3 + $0x78] sm:$0xf] %v1166_v48  ;;  %1311 = vmatprep.subr.mxu0 %v1281_v29 }
 0x403   : > { %v1118_v45 = vpop.permute.xlu0 %1117  ;;  %1312 = vmatpush1.msra.mxu0 %v1280_v33 }
 0x404   : > { %v1123_v42 = vsel %vm475_vm7, %v1118_v45, %v1120_v55  ;;  %1313 = vmatprep.subr.mxu0 %v1959_v50  ;;  %v1122_v43 = vpop.permute.xlu1 %1121 }
 0x405   : > { %1127 = vst [vmem:[#allocation3 + $0x118] sm:$0xf] %v1123_v42  ;;  %v1124_v34 = vsel %vm475_vm7, %v1120_v55, %v1122_v43  ;;  %1314 = vmatpush1.msra.mxu0 %v1962_v54  ;;  %v1268_v53 = vld [vmem:[#allocation3 + $0x50] sm:$0xff] }
 0x406   : > { %1128 = vst [vmem:[#allocation3 + $0xd0] sm:$0xf] %v1124_v34  ;;  %1315 = vmatprep.subr.mxu0 %v1277_v44 }
 0x407   : > { %v1104_v37 = vpop.permute.xlu0 %1103  ;;  %1316 = vmatpush1.msra.mxu0 %v1276_v35 }
 0x408   : > { %1317 = vmatprep.subr.mxu0 %v1969_v61  ;;  %v1102_v38 = vpop.permute.xlu1 %1101  ;;  %v1269_v18 = vld [vmem:[#allocation3] sm:$0xff] }
 0x409   : > { %v1106_v39 = vsel %vm456_vm5, %v1102_v38, %v1104_v37  ;;  %1318 = vmatpush1.msra.mxu0 %v1972_v63  ;;  %v1273_v40 = vld [vmem:[#allocation3 + $0x78] sm:$0xff] }
 0x40a   : > { %1110 = vst [vmem:[#allocation3 + $0xe0] sm:$0xf] %v1106_v39  ;;  %1319 = vmatprep.subr.mxu0 %v1273_v40 }
 0x40b   : > { %v1247_v50 = vpop.permute.xlu0 %1246  ;;  %1320 = vmatpush1.msra.mxu0 %v1272_v52 }
 0x40c   : > { %1321 = vmatprep.subr.mxu0 %v1978_v5  ;;  %v1100_v54 = vpop.permute.xlu1 %1099 }
 0x40d   : > { %v1105_v41 = vsel %vm456_vm5, %v1100_v54, %v1102_v38  ;;  %1322 = vmatpush1.msra.mxu0 %v1981_v7  ;;  %v1265_v5 = vld [vmem:[#allocation3 + $0xd0] sm:$0xff]  ;;  %v1264_v7 = vld [vmem:[#allocation3 + $0x118] sm:$0xff] }
 0x40e   : > { %1109 = vst [vmem:[#allocation3 + $0xd8] sm:$0xf] %v1105_v41  ;;  %1323 = vmatprep.subr.mxu0 %v1269_v18 }
 0x40f   : > { %v1245_v61 = vpop.permute.xlu0 %1244  ;;  %1324 = vmatpush1.msra.mxu0 %v1268_v53 }
 0x410   : > { %v1250_v63 = vsel %vm439_vm6, %v1245_v61, %v1247_v50  ;;  %1325 = vmatprep.subr.mxu0 %v1988_v27  ;;  %v1249_v59 = vpop.permute.xlu1 %1248 }
 0x411   : > { %1254 = vst [vmem:[#allocation3 + $0x98] sm:$0xf] %v1250_v63  ;;  %v1251_v58 = vsel %vm439_vm6, %v1247_v50, %v1249_v59  ;;  %1326 = vmatpush1.msra.mxu0 %v1991_v11  ;;  %v1261_v46 = vld [vmem:[#allocation3 + $0xe0] sm:$0xff] }
 0x412   : > { %1255 = vst [vmem:[#allocation3 + $0x40] sm:$0xf] %v1251_v58  ;;  %1327 = vmatprep.subr.mxu0 %v1265_v5 }
 0x413   : > { %1328 = vmatpush1.msra.mxu0 %v1264_v7 }
 0x414   : > { %1329 = vmatprep.subr.mxu0 %v1997_v19 }
 0x415   : > { %1330 = vmatpush1.msra.mxu0 %v1999_v20  ;;  %v1260_v47 = vld [vmem:[#allocation3 + $0xd8] sm:$0xff] }
 0x416   : > { %1331 = vmatprep.subr.mxu0 %v1261_v46 }
 0x417   : > { %1332 = vmatpush1.msra.mxu0 %v1260_v47 }
 0x418   : > { %1333 = vmatprep.subr.mxu0 %v2006_v22  ;;  %v1292_v11 = vld [vmem:[#allocation3 + $0x98] sm:$0xff] }
 0x419   : > { %1334 = vmatpush1.msra.mxu0 %v2009_v25  ;;  %v1293_v27 = vld [vmem:[#allocation3 + $0x40] sm:$0xff] }
 0x41a   : > { %1363 = vmatprep.subr.mxu0 %v1293_v27 }
 0x41b   : > { %1364 = vmatpush2.msra.mxu0 %v1292_v11 }
 0x41c   : > { %1365 = vmatprep.subr.mxu0 %v2014_v28  ;;  %v1385_v28 = vld [vmem:[#allocation2 + $0x18] sm:$0xff]  ;;  %v1393_v62 = vpop.permute.xlu0 %1392 }
 0x41d   : > { %1366 = vmatpush2.msra.mxu0 %v2017_v31  ;;  %v1297_v19 = vpop.permute.xlu1 %1296  ;;  %v1388_v31 = vld [vmem:[%s2130_s8] sm:$0xf] }
 0x41e   : > { %1368 = vmatmul.mubr.f32.vlgmr.msra.gmra.mxu0 %v2064_v13  ;;  %v1384_v13 = vld [vmem:[#allocation2] sm:$0xff] }
 0x4de   : > { %v1369_v20 = vpop.f32.mrf.mxu0 }
 0x4df   : > { %v1370_v49 = vadd.f32 %v1369_v20, %v1297_v19 }
 0x4e0   : > { %v1371_v51 = vpop.f32.mrf.mxu0 }
 0x4e1   : > { %v1374_v0 = vmax.f32 %v1370_v49, 0.0  ;;  %v1372_v56 = vadd.f32 %v1371_v51, %v1297_v19 }
 0x4e3   : > { %v1378_v1 = vrot.slane %v1374_v0, 4  ;;  %v1375_v22 = vmax.f32 %v1372_v56, 0.0 }
 0x4e5   : > { %1382 = vst [vmem:[#allocation2 + $0x20] sm:$0xf0] %v1378_v1  ;;  %v1379_v25 = vrot.slane %v1375_v22, 4 }
 0x4e7   : > { %1383 = vst [vmem:[#allocation2 + $0x28] sm:$0xf0] %v1379_v25 }
 0x4ec   : > { %v1386_v60 = vld [vmem:[#allocation2 + $0x20] sm:$0xff] }
 0x4ee   : > { %v1387_v57 = vld [vmem:[#allocation2 + $0x28] sm:$0xff] }
 0x4ef   : > { %1426 = vmatprep.subr.mxu1 %v1387_v57 }
 0x4f0   : > { %1427 = vmatpush1.msra.mxu1 %v1386_v60 }
 0x4f1   : > { %1428 = vmatprep.subr.mxu1 %v1385_v28 }
 0x4f2   : > { %1429 = vmatpush1.msra.mxu1 %v1384_v13 }
 0x4f3   : > { %1543 = vmatmul.mubr.msk.f32.vlgmr.msra.gmra.mxu1 %vm475_vm7, %v1388_v31 }
 0x5b3   : > { %v1464_v2 = vpop.f32.mrf.mxu1 }
 0x5b4   : > { %v1465_v4 = vadd.f32 %v1464_v2, %v1393_v62 }
 0x5b5   : > { %v1466_v24 = vpop.f32.mrf.mxu1 }
 0x5b6   : > { %v1467_v6 = vadd.f32 %v1466_v24, %v1393_v62  ;;  %v1469_v8 = vadd.f32 %v1465_v4, %v1716_v14 }
 0x5b8   : > { %v1470_v9 = vadd.f32 %v1467_v6, %v1722_v17 }
 0x5ba   : > { %v1473_v32 = vcombine.low %v1469_v8, %v1470_v9 }
 0x5bc   : > { %1475 = vst [vmem:[%s359_s30] sm:$0xff] %v1473_v32 }
 0x5bd PF: > { %s20_s13 = sadd.s32 1, %s1578_s13  }
 0x5be   : > { %p17_p4 = scmp.ge.s32.totalorder %s20_s13, 4  }
 0x5c0   :  { %19 = sbr.rel (!%p17_p4) target bundleno = 1 (0x1), region = 90 }

</bundles_post_ra>
